<compile_context>
chip_gen: v5e
topology: v5e:2x2
jax: 0.10.0
libtpu: 0.0.40
codegen_flags: <defaults>
</compile_context>

<pallas_src>
import functools

import jax
import jax.numpy as jnp
from jax.experimental import pallas as pl
from jax.experimental.pallas import tpu as pltpu

INTERMEDIATE = 64
LN_EPS = 1e-5

# Flips to False the first time pipeline_mode=pl.Buffered(1) is rejected.
_SINGLE_BUFFER_CONSTS_OK = True


def _cdiv(a, b):
    return (a + b - 1) // b


def _round_up(a, b):
    return _cdiv(a, b) * b


def _gelu(x, approx):
    if approx:
        # tanh approximation: lands on the EUP slot (use only when profiling
        # shows the VALU slot binding, e.g. bf16-input v7x); differs slightly
        # from torch.nn.GELU(approximate='none').
        return jax.nn.gelu(x, approximate=True)
    # exact (erf) GELU matches the torch default
    return 0.5 * x * (1.0 + jax.lax.erf(x * jnp.float32(0.7071067811865476)))


def head_kernel(x_ref,                                  # (TB*L, H) batch tile
                w1a_ref, b1a_ref, w1b_ref, b1b_ref,     # mlp1
                w2a_ref, b2a_ref, w2b_ref, b2b_ref,     # mlp2
                lnw_ref,                                # LayerNorm weight (no bias)
                wf_ref,                                 # final Linear, lane-padded
                out_ref,                                # (TB, nl_pad) lane-dense
                *, seq_len, approx_gelu):
    TBL, _ = x_ref.shape
    TB = TBL // seq_len
    I = w1a_ref.shape[1]
    cdt = w1b_ref.dtype            # MXU operand dtype (bf16 path stays bf16)

    # ---- mlp1 first Linear + GELU over all TB*L positions (one big matmul) ----
    h = jnp.dot(x_ref[...], w1a_ref[...], preferred_element_type=jnp.float32)
    h = _gelu(h + b1a_ref[...].astype(jnp.float32), approx_gelu)   # (TB*L, I) f32

    # ---- sequence mean hoisted before mlp1's second Linear (mean is linear) ----
    # NOTE: the reshape is relayout-free only when seq_len % 8 == 0; it stays
    # correct (just slower, an XLU copy) for other L.
    pooled = jnp.mean(h.reshape(TB, seq_len, I), axis=1)           # (TB, I) f32

    # ---- mlp1 second Linear: (TB, I) @ (I, I) instead of (TB*L, I) @ (I, I) ----
    p = jnp.dot(pooled.astype(cdt), w1b_ref[...],
                preferred_element_type=jnp.float32)
    p = p + b1b_ref[...].astype(jnp.float32)

    # ---- mlp2: Linear -> GELU -> Linear ----
    g = jnp.dot(p.astype(cdt), w2a_ref[...], preferred_element_type=jnp.float32)
    g = _gelu(g + b2a_ref[...].astype(jnp.float32), approx_gelu)
    g = jnp.dot(g.astype(cdt), w2b_ref[...], preferred_element_type=jnp.float32)
    g = g + b2b_ref[...].astype(jnp.float32)

    # ---- LayerNorm(intermediate_size, bias=False), eps=1e-5, in f32 ----
    mu = jnp.mean(g, axis=-1, keepdims=True)
    var = jnp.mean(jnp.square(g - mu), axis=-1, keepdims=True)
    gn = (g - mu) * jax.lax.rsqrt(var + LN_EPS) * lnw_ref[...].astype(jnp.float32)

    # ---- final Linear (no bias); lane-dense (TB, nl_pad) store ----
    out_ref[...] = jnp.dot(gn.astype(cdt), wf_ref[...],
                           preferred_element_type=jnp.float32).astype(out_ref.dtype)


def _default_vmem_limit_bytes():
    """Scoped-VMEM request adapted to the chip generation.

    ~96 MiB on v5e/v6e (128 MiB physical), ~48 MiB on v7x (64 MiB physical)."""
    try:
        cap = int(pltpu.get_tpu_info().vmem_capacity_bytes)
    except Exception:
        cap = 64 << 20            # conservative (v7x-sized) fallback
    return min(100 << 20, max(32 << 20, (cap * 3) // 4))


def _choose_batch_tile(B, L, H, itemsize, nl_pad, vmem_limit_bytes):
    """Batch tile sized from the VMEM budget.

    Accounts for the double-buffered x block AND the lane-padded f32 GELU
    intermediate h (I=64 pads to 128 lanes), plus the out block; caps the tile
    so there are >= 2 grid steps (both v7x TensorCores get work) when B allows.
    """
    I = INTERMEDIATE
    # per-batch-row VMEM footprint of the streamed path (h counted twice to
    # cover the reshape view conservatively)
    per_row = 2 * L * H * itemsize + 2 * L * 128 * 4 + 2 * nl_pad * 4
    # weights/biases, worst case f32 and double-buffered
    weight_bytes = 2 * 4 * (H * I + 3 * I * I + 5 * I + I * nl_pad)
    budget = max(1 << 20, int(vmem_limit_bytes) - weight_bytes - (4 << 20))
    rows = max(8, budget // max(1, per_row))
    if B <= 8:
        return B                         # single tile; blocks equal full array dims
    # ensure >= 2 grid steps so dimension_semantics=("parallel",) can shard
    # batch tiles across both v7x TensorCores
    rows = min(rows, _round_up(_cdiv(B, 2), 8))
    n_tiles = _cdiv(B, rows)
    return _round_up(_cdiv(B, n_tiles), 8)   # sublane-dense, full tiles after pad


def _build_specs(TB, L, H, nl_pad, single_buffer_consts):
    I = INTERMEDIATE

    def const(shape):
        n = len(shape)
        imap = lambda b, n=n: (0,) * n       # constant block index across the grid
        if single_buffer_consts:
            # never re-fetched -> a single VMEM buffer is enough (halves the
            # constant blocks' VMEM, freeing budget for a bigger x tile)
            return pl.BlockSpec(shape, imap, pipeline_mode=pl.Buffered(1))
        return pl.BlockSpec(shape, imap)

    in_specs = [
        pl.BlockSpec((TB * L, H), lambda b: (b, 0)),                  # x tile
        const((H, I)), const((1, I)), const((I, I)), const((1, I)),  # mlp1
        const((I, I)), const((1, I)), const((I, I)), const((1, I)),  # mlp2
        const((1, I)),                                                # ln weight
        const((I, nl_pad)),                                           # final (padded)
    ]
    out_specs = pl.BlockSpec((TB, nl_pad), lambda b: (b, 0))
    return in_specs, out_specs


def _run(x2, params, *, TB, L, H, nl_pad, Bp, vmem_limit_bytes, approx_gelu,
         single_buffer_consts):
    in_specs, out_specs = _build_specs(TB, L, H, nl_pad, single_buffer_consts)
    return pl.pallas_call(
        functools.partial(head_kernel, seq_len=L, approx_gelu=approx_gelu),
        out_shape=jax.ShapeDtypeStruct((Bp, nl_pad), jnp.float32),
        grid=(Bp // TB,),
        in_specs=in_specs,
        out_specs=out_specs,
        compiler_params=pltpu.CompilerParams(
            dimension_semantics=("parallel",),
            vmem_limit_bytes=vmem_limit_bytes),
    )(x2, *params)


def lightweight_mlp_head(x, params, num_labels, *, batch_tile=None,
                         vmem_limit_bytes=None, approx_gelu=False):
    """x: (B, L, H); params: see init_params; returns (B, num_labels) float32."""
    global _SINGLE_BUFFER_CONSTS_OK
    assert x.ndim == 3, "x must be (batch, seq, hidden)"
    B, L, H = x.shape
    I = INTERMEDIATE
    nl_pad = _round_up(max(num_labels, 1), 128)      # lane-dense output width
    if vmem_limit_bytes is None:
        vmem_limit_bytes = _default_vmem_limit_bytes()

    # Enforce a single compute dtype (x drives it); mixed bf16/f32 operands
    # would otherwise take an unintended mixed-precision MXU path.
    params = tuple(p.astype(x.dtype) for p in params)
    (w1a, b1a, w1b, b1b, w2a, b2a, w2b, b2b, lnw, wf) = params
    assert wf.shape == (I, num_labels)
    # Zero-pad the final weight so the kernel's output store is 128-lane dense.
    wf = jnp.pad(wf, ((0, 0), (0, nl_pad - num_labels)))
    params = (w1a, b1a, w1b, b1b, w2a, b2a, w2b, b2b, lnw, wf)

    TB = batch_tile if batch_tile is not None else _choose_batch_tile(
        B, L, H, x.dtype.itemsize, nl_pad, vmem_limit_bytes)
    TB = max(1, min(TB, B))
    if _cdiv(B, TB) > 1 and TB % 8 != 0:
        TB = _round_up(TB, 8)            # keep multi-tile blocks sublane-dense
    n_tiles = _cdiv(B, TB)
    Bp = n_tiles * TB
    if Bp != B:
        # Zero-pad the batch so every tile is full: no partial tail tile, no
        # uninitialized rows through GELU (zero rows give finite garbage that
        # is sliced off below).
        x = jnp.pad(x, ((0, Bp - B), (0, 0), (0, 0)))

    # Wrapper-side flatten: the first matmul sees one (TB*L, H) operand and
    # the x block DMA is sublane/lane dense regardless of dtype packing.
    x2 = x.reshape(Bp * L, H)

    kwargs = dict(TB=TB, L=L, H=H, nl_pad=nl_pad, Bp=Bp,
                  vmem_limit_bytes=vmem_limit_bytes, approx_gelu=approx_gelu)
    if _SINGLE_BUFFER_CONSTS_OK:
        try:
            out = _run(x2, params, single_buffer_consts=True, **kwargs)
        except Exception:
            # pipeline_mode=pl.Buffered(1) unsupported on this jax/libtpu:
            # fall back to default double-buffered constant blocks.
            _SINGLE_BUFFER_CONSTS_OK = False
            out = _run(x2, params, single_buffer_consts=False, **kwargs)
    else:
        out = _run(x2, params, single_buffer_consts=False, **kwargs)

    return out[:B, :num_labels]


def init_params(key, hidden_size, num_labels, dtype=jnp.float32):
    I = INTERMEDIATE
    ks = jax.random.split(key, 9)
    scale = 0.05
    w1a = scale * jax.random.normal(ks[0], (hidden_size, I), jnp.float32)
    b1a = scale * jax.random.normal(ks[1], (1, I), jnp.float32)
    w1b = scale * jax.random.normal(ks[2], (I, I), jnp.float32)
    b1b = scale * jax.random.normal(ks[3], (1, I), jnp.float32)
    w2a = scale * jax.random.normal(ks[4], (I, I), jnp.float32)
    b2a = scale * jax.random.normal(ks[5], (1, I), jnp.float32)
    w2b = scale * jax.random.normal(ks[6], (I, I), jnp.float32)
    b2b = scale * jax.random.normal(ks[7], (1, I), jnp.float32)
    lnw = jnp.ones((1, I), jnp.float32)
    wf = scale * jax.random.normal(ks[8], (I, num_labels), jnp.float32)
    return tuple(p.astype(dtype) for p in
                 (w1a, b1a, w1b, b1b, w2a, b2a, w2b, b2b, lnw, wf))


def reference(x, params):
    (w1a, b1a, w1b, b1b, w2a, b2a, w2b, b2b, lnw, wf) = [
        p.astype(jnp.float32) for p in params]
    xf = x.astype(jnp.float32)
    h = _gelu(xf @ w1a + b1a, False) @ w1b + b1b   # (B, L, I)
    h = h.mean(axis=1)                             # (B, I)
    g = _gelu(h @ w2a + b2a, False) @ w2b + b2b    # (B, I)
    mu = g.mean(axis=-1, keepdims=True)
    var = ((g - mu) ** 2).mean(axis=-1, keepdims=True)
    gn = (g - mu) * jax.lax.rsqrt(var + LN_EPS) * lnw
    return gn @ wf


if __name__ == "__main__":
    B, L, H = 2, 8, 32           # batch, sequence, config.hidden_size
    NUM_LABELS = 4               # config.num_labels

    key = jax.random.PRNGKey(0)
    k_x, k_p = jax.random.split(key)
    x = jax.random.normal(k_x, (B, L, H), jnp.float32)
    params = init_params(k_p, H, NUM_LABELS)

    # f32 path: must match the f32 reference tightly.
    out = jax.block_until_ready(lightweight_mlp_head(x, params, NUM_LABELS))
    ref = reference(x, params)
    assert out.shape == (B, NUM_LABELS)
    assert jnp.allclose(out, ref, atol=1e-5, rtol=1e-5), (out, ref)

    # bf16 streaming path (half the HBM traffic for x, MXU-native operands,
    # f32 accumulation): check against the f32 reference with bf16 tolerance.
    x_bf = x.astype(jnp.bfloat16)
    params_bf = tuple(p.astype(jnp.bfloat16) for p in params)
    out_bf = jax.block_until_ready(lightweight_mlp_head(x_bf, params_bf, NUM_LABELS))
    assert out_bf.shape == (B, NUM_LABELS)
    assert jnp.allclose(out_bf, ref, atol=1e-1, rtol=1e-1), (out_bf, ref)

    print("KERNEL_OK")
</pallas_src>

<mosaic_0001>
module attributes {stable_mosaic.version = 11 : i64} {
  func.func @head_kernel(%arg0: i32, %arg1: memref<16x32xf32, #tpu.memory_space<vmem>>, %arg2: memref<32x64xf32, #tpu.memory_space<vmem>>, %arg3: memref<1x64xf32, #tpu.memory_space<vmem>>, %arg4: memref<64x64xf32, #tpu.memory_space<vmem>>, %arg5: memref<1x64xf32, #tpu.memory_space<vmem>>, %arg6: memref<64x64xf32, #tpu.memory_space<vmem>>, %arg7: memref<1x64xf32, #tpu.memory_space<vmem>>, %arg8: memref<64x64xf32, #tpu.memory_space<vmem>>, %arg9: memref<1x64xf32, #tpu.memory_space<vmem>>, %arg10: memref<1x64xf32, #tpu.memory_space<vmem>>, %arg11: memref<64x128xf32, #tpu.memory_space<vmem>>, %arg12: memref<2x128xf32, #tpu.memory_space<vmem>>) attributes {dimension_semantics = [#tpu.dimension_semantics<parallel>], iteration_bounds = array<i64: 1>, scalar_prefetch = 0 : i64, scratch_operands = 0 : i64, tpu.core_type = #tpu.core_type<tc>, window_params = [{transform_indices = @transform_0, window_bounds = array<i64: 16, 32>}, {pipeline_mode = #tpu.pipeline_mode<synchronous>, transform_indices = @transform_1, window_bounds = array<i64: 32, 64>}, {pipeline_mode = #tpu.pipeline_mode<synchronous>, transform_indices = @transform_2, window_bounds = array<i64: 1, 64>}, {pipeline_mode = #tpu.pipeline_mode<synchronous>, transform_indices = @transform_3, window_bounds = array<i64: 64, 64>}, {pipeline_mode = #tpu.pipeline_mode<synchronous>, transform_indices = @transform_4, window_bounds = array<i64: 1, 64>}, {pipeline_mode = #tpu.pipeline_mode<synchronous>, transform_indices = @transform_5, window_bounds = array<i64: 64, 64>}, {pipeline_mode = #tpu.pipeline_mode<synchronous>, transform_indices = @transform_6, window_bounds = array<i64: 1, 64>}, {pipeline_mode = #tpu.pipeline_mode<synchronous>, transform_indices = @transform_7, window_bounds = array<i64: 64, 64>}, {pipeline_mode = #tpu.pipeline_mode<synchronous>, transform_indices = @transform_8, window_bounds = array<i64: 1, 64>}, {pipeline_mode = #tpu.pipeline_mode<synchronous>, transform_indices = @transform_9, window_bounds = array<i64: 1, 64>}, {pipeline_mode = #tpu.pipeline_mode<synchronous>, transform_indices = @transform_10, window_bounds = array<i64: 64, 128>}, {transform_indices = @transform_11, window_bounds = array<i64: 2, 128>}]} {
    %c0 = arith.constant 0 : index
    %c0_0 = arith.constant 0 : index
    %0 = vector.load %arg1[%c0, %c0_0] : memref<16x32xf32, #tpu.memory_space<vmem>>, vector<16x32xf32>
    %c0_1 = arith.constant 0 : index
    %c0_2 = arith.constant 0 : index
    %1 = vector.load %arg2[%c0_1, %c0_2] : memref<32x64xf32, #tpu.memory_space<vmem>>, vector<32x64xf32>
    %cst = arith.constant dense<0.000000e+00> : vector<16x64xf32>
    %2 = tpu.matmul %0, %1, %cst {dimension_numbers = #tpu.dot_dimension_numbers<[1], [0], [0], [1], [0, 0, 1, 1], [], []>} : vector<16x32xf32>, vector<32x64xf32>, vector<16x64xf32> -> vector<16x64xf32>
    %c0_3 = arith.constant 0 : index
    %c0_4 = arith.constant 0 : index
    %3 = vector.load %arg3[%c0_3, %c0_4] : memref<1x64xf32, #tpu.memory_space<vmem>>, vector<1x64xf32>
    %4 = vector.broadcast %3 : vector<1x64xf32> to vector<16x64xf32>
    %5 = arith.addf %2, %4 : vector<16x64xf32>
    %cst_5 = arith.constant 5.000000e-01 : f32
    %6 = vector.broadcast %cst_5 : f32 to vector<16x64xf32>
    %7 = arith.mulf %6, %5 : vector<16x64xf32>
    %cst_6 = arith.constant 0.707106769 : f32
    %8 = vector.broadcast %cst_6 : f32 to vector<16x64xf32>
    %9 = arith.mulf %5, %8 : vector<16x64xf32>
    %10 = math.erf %9 : vector<16x64xf32>
    %cst_7 = arith.constant 1.000000e+00 : f32
    %11 = vector.broadcast %cst_7 : f32 to vector<16x64xf32>
    %12 = arith.addf %11, %10 : vector<16x64xf32>
    %13 = arith.mulf %7, %12 : vector<16x64xf32>
    %14 = vector.shape_cast %13 : vector<16x64xf32> to vector<2x8x64xf32>
    %cst_8 = arith.constant dense<0.000000e+00> : vector<2x64xf32>
    %15 = vector.multi_reduction <add>, %14, %cst_8 [1] : vector<2x8x64xf32> to vector<2x64xf32>
    %cst_9 = arith.constant 8.000000e+00 : f32
    %16 = vector.broadcast %cst_9 : f32 to vector<2x64xf32>
    %17 = arith.divf %15, %16 : vector<2x64xf32>
    %c0_10 = arith.constant 0 : index
    %c0_11 = arith.constant 0 : index
    %18 = vector.load %arg4[%c0_10, %c0_11] : memref<64x64xf32, #tpu.memory_space<vmem>>, vector<64x64xf32>
    %cst_12 = arith.constant dense<0.000000e+00> : vector<2x64xf32>
    %19 = tpu.matmul %17, %18, %cst_12 {dimension_numbers = #tpu.dot_dimension_numbers<[1], [0], [0], [1], [0, 0, 1, 1], [], []>} : vector<2x64xf32>, vector<64x64xf32>, vector<2x64xf32> -> vector<2x64xf32>
    %c0_13 = arith.constant 0 : index
    %c0_14 = arith.constant 0 : index
    %20 = vector.load %arg5[%c0_13, %c0_14] : memref<1x64xf32, #tpu.memory_space<vmem>>, vector<1x64xf32>
    %21 = vector.broadcast %20 : vector<1x64xf32> to vector<2x64xf32>
    %22 = arith.addf %19, %21 : vector<2x64xf32>
    %c0_15 = arith.constant 0 : index
    %c0_16 = arith.constant 0 : index
    %23 = vector.load %arg6[%c0_15, %c0_16] : memref<64x64xf32, #tpu.memory_space<vmem>>, vector<64x64xf32>
    %cst_17 = arith.constant dense<0.000000e+00> : vector<2x64xf32>
    %24 = tpu.matmul %22, %23, %cst_17 {dimension_numbers = #tpu.dot_dimension_numbers<[1], [0], [0], [1], [0, 0, 1, 1], [], []>} : vector<2x64xf32>, vector<64x64xf32>, vector<2x64xf32> -> vector<2x64xf32>
    %c0_18 = arith.constant 0 : index
    %c0_19 = arith.constant 0 : index
    %25 = vector.load %arg7[%c0_18, %c0_19] : memref<1x64xf32, #tpu.memory_space<vmem>>, vector<1x64xf32>
    %26 = vector.broadcast %25 : vector<1x64xf32> to vector<2x64xf32>
    %27 = arith.addf %24, %26 : vector<2x64xf32>
    %cst_20 = arith.constant 5.000000e-01 : f32
    %28 = vector.broadcast %cst_20 : f32 to vector<2x64xf32>
    %29 = arith.mulf %28, %27 : vector<2x64xf32>
    %cst_21 = arith.constant 0.707106769 : f32
    %30 = vector.broadcast %cst_21 : f32 to vector<2x64xf32>
    %31 = arith.mulf %27, %30 : vector<2x64xf32>
    %32 = math.erf %31 : vector<2x64xf32>
    %cst_22 = arith.constant 1.000000e+00 : f32
    %33 = vector.broadcast %cst_22 : f32 to vector<2x64xf32>
    %34 = arith.addf %33, %32 : vector<2x64xf32>
    %35 = arith.mulf %29, %34 : vector<2x64xf32>
    %c0_23 = arith.constant 0 : index
    %c0_24 = arith.constant 0 : index
    %36 = vector.load %arg8[%c0_23, %c0_24] : memref<64x64xf32, #tpu.memory_space<vmem>>, vector<64x64xf32>
    %cst_25 = arith.constant dense<0.000000e+00> : vector<2x64xf32>
    %37 = tpu.matmul %35, %36, %cst_25 {dimension_numbers = #tpu.dot_dimension_numbers<[1], [0], [0], [1], [0, 0, 1, 1], [], []>} : vector<2x64xf32>, vector<64x64xf32>, vector<2x64xf32> -> vector<2x64xf32>
    %c0_26 = arith.constant 0 : index
    %c0_27 = arith.constant 0 : index
    %38 = vector.load %arg9[%c0_26, %c0_27] : memref<1x64xf32, #tpu.memory_space<vmem>>, vector<1x64xf32>
    %39 = vector.broadcast %38 : vector<1x64xf32> to vector<2x64xf32>
    %40 = arith.addf %37, %39 : vector<2x64xf32>
    %cst_28 = arith.constant dense<0.000000e+00> : vector<2xf32>
    %41 = vector.multi_reduction <add>, %40, %cst_28 [1] : vector<2x64xf32> to vector<2xf32>
    %42 = vector.shape_cast %41 : vector<2xf32> to vector<2x1xf32>
    %cst_29 = arith.constant 6.400000e+01 : f32
    %43 = vector.broadcast %cst_29 : f32 to vector<2x1xf32>
    %44 = arith.divf %42, %43 : vector<2x1xf32>
    %45 = vector.broadcast %44 : vector<2x1xf32> to vector<2x64xf32>
    %46 = arith.subf %40, %45 : vector<2x64xf32>
    %47 = arith.mulf %46, %46 : vector<2x64xf32>
    %cst_30 = arith.constant dense<0.000000e+00> : vector<2xf32>
    %48 = vector.multi_reduction <add>, %47, %cst_30 [1] : vector<2x64xf32> to vector<2xf32>
    %49 = vector.shape_cast %48 : vector<2xf32> to vector<2x1xf32>
    %cst_31 = arith.constant 6.400000e+01 : f32
    %50 = vector.broadcast %cst_31 : f32 to vector<2x1xf32>
    %51 = arith.divf %49, %50 : vector<2x1xf32>
    %52 = vector.broadcast %44 : vector<2x1xf32> to vector<2x64xf32>
    %53 = arith.subf %40, %52 : vector<2x64xf32>
    %cst_32 = arith.constant 9.99999974E-6 : f32
    %54 = vector.broadcast %cst_32 : f32 to vector<2x1xf32>
    %55 = arith.addf %51, %54 : vector<2x1xf32>
    %56 = math.rsqrt %55 : vector<2x1xf32>
    %57 = vector.broadcast %56 : vector<2x1xf32> to vector<2x64xf32>
    %58 = arith.mulf %53, %57 : vector<2x64xf32>
    %c0_33 = arith.constant 0 : index
    %c0_34 = arith.constant 0 : index
    %59 = vector.load %arg10[%c0_33, %c0_34] : memref<1x64xf32, #tpu.memory_space<vmem>>, vector<1x64xf32>
    %60 = vector.broadcast %59 : vector<1x64xf32> to vector<2x64xf32>
    %61 = arith.mulf %58, %60 : vector<2x64xf32>
    %c0_35 = arith.constant 0 : index
    %c0_36 = arith.constant 0 : index
    %62 = vector.load %arg11[%c0_35, %c0_36] : memref<64x128xf32, #tpu.memory_space<vmem>>, vector<64x128xf32>
    %cst_37 = arith.constant dense<0.000000e+00> : vector<2x128xf32>
    %63 = tpu.matmul %61, %62, %cst_37 {dimension_numbers = #tpu.dot_dimension_numbers<[1], [0], [0], [1], [0, 0, 1, 1], [], []>} : vector<2x64xf32>, vector<64x128xf32>, vector<2x128xf32> -> vector<2x128xf32>
    %c0_38 = arith.constant 0 : index
    %c0_39 = arith.constant 0 : index
    %64 = vector.load %arg12[%c0_38, %c0_39] : memref<2x128xf32, #tpu.memory_space<vmem>>, vector<2x128xf32>
    tpu.vector_store %arg12[%c0_38, %c0_39], %63 {strides = array<i32>} : memref<2x128xf32, #tpu.memory_space<vmem>>, vector<2x128xf32>,
    return
  }
  func.func @transform_0(%arg0: i32) -> (i32, i32) {
    %c0_i32 = arith.constant 0 : i32
    %c0_i32_0 = arith.constant 0 : i32
    return %arg0, %c0_i32 : i32, i32
  }
  func.func @transform_1(%arg0: i32) -> (i32, i32) {
    %c0_i32 = arith.constant 0 : i32
    %c0_i32_0 = arith.constant 0 : i32
    %c0_i32_1 = arith.constant 0 : i32
    return %c0_i32, %c0_i32_0 : i32, i32
  }
  func.func @transform_2(%arg0: i32) -> (i32, i32) {
    %c0_i32 = arith.constant 0 : i32
    %c0_i32_0 = arith.constant 0 : i32
    %c0_i32_1 = arith.constant 0 : i32
    return %c0_i32, %c0_i32_0 : i32, i32
  }
  func.func @transform_3(%arg0: i32) -> (i32, i32) {
    %c0_i32 = arith.constant 0 : i32
    %c0_i32_0 = arith.constant 0 : i32
    %c0_i32_1 = arith.constant 0 : i32
    return %c0_i32, %c0_i32_0 : i32, i32
  }
  func.func @transform_4(%arg0: i32) -> (i32, i32) {
    %c0_i32 = arith.constant 0 : i32
    %c0_i32_0 = arith.constant 0 : i32
    %c0_i32_1 = arith.constant 0 : i32
    return %c0_i32, %c0_i32_0 : i32, i32
  }
  func.func @transform_5(%arg0: i32) -> (i32, i32) {
    %c0_i32 = arith.constant 0 : i32
    %c0_i32_0 = arith.constant 0 : i32
    %c0_i32_1 = arith.constant 0 : i32
    return %c0_i32, %c0_i32_0 : i32, i32
  }
  func.func @transform_6(%arg0: i32) -> (i32, i32) {
    %c0_i32 = arith.constant 0 : i32
    %c0_i32_0 = arith.constant 0 : i32
    %c0_i32_1 = arith.constant 0 : i32
    return %c0_i32, %c0_i32_0 : i32, i32
  }
  func.func @transform_7(%arg0: i32) -> (i32, i32) {
    %c0_i32 = arith.constant 0 : i32
    %c0_i32_0 = arith.constant 0 : i32
    %c0_i32_1 = arith.constant 0 : i32
    return %c0_i32, %c0_i32_0 : i32, i32
  }
  func.func @transform_8(%arg0: i32) -> (i32, i32) {
    %c0_i32 = arith.constant 0 : i32
    %c0_i32_0 = arith.constant 0 : i32
    %c0_i32_1 = arith.constant 0 : i32
    return %c0_i32, %c0_i32_0 : i32, i32
  }
  func.func @transform_9(%arg0: i32) -> (i32, i32) {
    %c0_i32 = arith.constant 0 : i32
    %c0_i32_0 = arith.constant 0 : i32
    %c0_i32_1 = arith.constant 0 : i32
    return %c0_i32, %c0_i32_0 : i32, i32
  }
  func.func @transform_10(%arg0: i32) -> (i32, i32) {
    %c0_i32 = arith.constant 0 : i32
    %c0_i32_0 = arith.constant 0 : i32
    %c0_i32_1 = arith.constant 0 : i32
    return %c0_i32, %c0_i32_0 : i32, i32
  }
  func.func @transform_11(%arg0: i32) -> (i32, i32) {
    %c0_i32 = arith.constant 0 : i32
    %c0_i32_0 = arith.constant 0 : i32
    return %arg0, %c0_i32 : i32, i32
  }
}

module attributes {stable_mosaic.version = 11 : i64} {
  func.func @head_kernel(%arg0: i32, %arg1: memref<16x32xf32, #tpu.memory_space<vmem>>, %arg2: memref<32x64xf32, #tpu.memory_space<vmem>>, %arg3: memref<1x64xf32, #tpu.memory_space<vmem>>, %arg4: memref<64x64xf32, #tpu.memory_space<vmem>>, %arg5: memref<1x64xf32, #tpu.memory_space<vmem>>, %arg6: memref<64x64xf32, #tpu.memory_space<vmem>>, %arg7: memref<1x64xf32, #tpu.memory_space<vmem>>, %arg8: memref<64x64xf32, #tpu.memory_space<vmem>>, %arg9: memref<1x64xf32, #tpu.memory_space<vmem>>, %arg10: memref<1x64xf32, #tpu.memory_space<vmem>>, %arg11: memref<64x128xf32, #tpu.memory_space<vmem>>, %arg12: memref<2x128xf32, #tpu.memory_space<vmem>>) attributes {dimension_semantics = [#tpu.dimension_semantics<parallel>], iteration_bounds = array<i64: 1>, scalar_prefetch = 0 : i64, scratch_operands = 0 : i64, tpu.core_type = #tpu.core_type<tc>, window_params = [{transform_indices = @transform_0, window_bounds = array<i64: 16, 32>}, {pipeline_mode = #tpu.pipeline_mode<synchronous>, transform_indices = @transform_1, window_bounds = array<i64: 32, 64>}, {pipeline_mode = #tpu.pipeline_mode<synchronous>, transform_indices = @transform_2, window_bounds = array<i64: 1, 64>}, {pipeline_mode = #tpu.pipeline_mode<synchronous>, transform_indices = @transform_3, window_bounds = array<i64: 64, 64>}, {pipeline_mode = #tpu.pipeline_mode<synchronous>, transform_indices = @transform_4, window_bounds = array<i64: 1, 64>}, {pipeline_mode = #tpu.pipeline_mode<synchronous>, transform_indices = @transform_5, window_bounds = array<i64: 64, 64>}, {pipeline_mode = #tpu.pipeline_mode<synchronous>, transform_indices = @transform_6, window_bounds = array<i64: 1, 64>}, {pipeline_mode = #tpu.pipeline_mode<synchronous>, transform_indices = @transform_7, window_bounds = array<i64: 64, 64>}, {pipeline_mode = #tpu.pipeline_mode<synchronous>, transform_indices = @transform_8, window_bounds = array<i64: 1, 64>}, {pipeline_mode = #tpu.pipeline_mode<synchronous>, transform_indices = @transform_9, window_bounds = array<i64: 1, 64>}, {pipeline_mode = #tpu.pipeline_mode<synchronous>, transform_indices = @transform_10, window_bounds = array<i64: 64, 128>}, {transform_indices = @transform_11, window_bounds = array<i64: 2, 128>}]} {
    %c0 = arith.constant 0 : index
    %c0_0 = arith.constant 0 : index
    %0 = vector.load %arg1[%c0, %c0_0] : memref<16x32xf32, #tpu.memory_space<vmem>>, vector<16x32xf32>
    %c0_1 = arith.constant 0 : index
    %c0_2 = arith.constant 0 : index
    %1 = vector.load %arg2[%c0_1, %c0_2] : memref<32x64xf32, #tpu.memory_space<vmem>>, vector<32x64xf32>
    %cst = arith.constant dense<0.000000e+00> : vector<16x64xf32>
    %2 = tpu.matmul %0, %1, %cst {dimension_numbers = #tpu.dot_dimension_numbers<[1], [0], [0], [1], [0, 0, 1, 1], [], []>} : vector<16x32xf32>, vector<32x64xf32>, vector<16x64xf32> -> vector<16x64xf32>
    %c0_3 = arith.constant 0 : index
    %c0_4 = arith.constant 0 : index
    %3 = vector.load %arg3[%c0_3, %c0_4] : memref<1x64xf32, #tpu.memory_space<vmem>>, vector<1x64xf32>
    %4 = vector.broadcast %3 : vector<1x64xf32> to vector<16x64xf32>
    %5 = arith.addf %2, %4 : vector<16x64xf32>
    %cst_5 = arith.constant 5.000000e-01 : f32
    %6 = vector.broadcast %cst_5 : f32 to vector<16x64xf32>
    %7 = arith.mulf %6, %5 : vector<16x64xf32>
    %cst_6 = arith.constant 0.707106769 : f32
    %8 = vector.broadcast %cst_6 : f32 to vector<16x64xf32>
    %9 = arith.mulf %5, %8 : vector<16x64xf32>
    %10 = math.erf %9 : vector<16x64xf32>
    %cst_7 = arith.constant 1.000000e+00 : f32
    %11 = vector.broadcast %cst_7 : f32 to vector<16x64xf32>
    %12 = arith.addf %11, %10 : vector<16x64xf32>
    %13 = arith.mulf %7, %12 : vector<16x64xf32>
    %14 = vector.shape_cast %13 : vector<16x64xf32> to vector<2x8x64xf32>
    %cst_8 = arith.constant dense<0.000000e+00> : vector<2x64xf32>
    %15 = vector.multi_reduction <add>, %14, %cst_8 [1] : vector<2x8x64xf32> to vector<2x64xf32>
    %cst_9 = arith.constant 8.000000e+00 : f32
    %16 = vector.broadcast %cst_9 : f32 to vector<2x64xf32>
    %17 = arith.divf %15, %16 : vector<2x64xf32>
    %c0_10 = arith.constant 0 : index
    %c0_11 = arith.constant 0 : index
    %18 = vector.load %arg4[%c0_10, %c0_11] : memref<64x64xf32, #tpu.memory_space<vmem>>, vector<64x64xf32>
    %cst_12 = arith.constant dense<0.000000e+00> : vector<2x64xf32>
    %19 = tpu.matmul %17, %18, %cst_12 {dimension_numbers = #tpu.dot_dimension_numbers<[1], [0], [0], [1], [0, 0, 1, 1], [], []>} : vector<2x64xf32>, vector<64x64xf32>, vector<2x64xf32> -> vector<2x64xf32>
    %c0_13 = arith.constant 0 : index
    %c0_14 = arith.constant 0 : index
    %20 = vector.load %arg5[%c0_13, %c0_14] : memref<1x64xf32, #tpu.memory_space<vmem>>, vector<1x64xf32>
    %21 = vector.broadcast %20 : vector<1x64xf32> to vector<2x64xf32>
    %22 = arith.addf %19, %21 : vector<2x64xf32>
    %c0_15 = arith.constant 0 : index
    %c0_16 = arith.constant 0 : index
    %23 = vector.load %arg6[%c0_15, %c0_16] : memref<64x64xf32, #tpu.memory_space<vmem>>, vector<64x64xf32>
    %cst_17 = arith.constant dense<0.000000e+00> : vector<2x64xf32>
    %24 = tpu.matmul %22, %23, %cst_17 {dimension_numbers = #tpu.dot_dimension_numbers<[1], [0], [0], [1], [0, 0, 1, 1], [], []>} : vector<2x64xf32>, vector<64x64xf32>, vector<2x64xf32> -> vector<2x64xf32>
    %c0_18 = arith.constant 0 : index
    %c0_19 = arith.constant 0 : index
    %25 = vector.load %arg7[%c0_18, %c0_19] : memref<1x64xf32, #tpu.memory_space<vmem>>, vector<1x64xf32>
    %26 = vector.broadcast %25 : vector<1x64xf32> to vector<2x64xf32>
    %27 = arith.addf %24, %26 : vector<2x64xf32>
    %cst_20 = arith.constant 5.000000e-01 : f32
    %28 = vector.broadcast %cst_20 : f32 to vector<2x64xf32>
    %29 = arith.mulf %28, %27 : vector<2x64xf32>
    %cst_21 = arith.constant 0.707106769 : f32
    %30 = vector.broadcast %cst_21 : f32 to vector<2x64xf32>
    %31 = arith.mulf %27, %30 : vector<2x64xf32>
    %32 = math.erf %31 : vector<2x64xf32>
    %cst_22 = arith.constant 1.000000e+00 : f32
    %33 = vector.broadcast %cst_22 : f32 to vector<2x64xf32>
    %34 = arith.addf %33, %32 : vector<2x64xf32>
    %35 = arith.mulf %29, %34 : vector<2x64xf32>
    %c0_23 = arith.constant 0 : index
    %c0_24 = arith.constant 0 : index
    %36 = vector.load %arg8[%c0_23, %c0_24] : memref<64x64xf32, #tpu.memory_space<vmem>>, vector<64x64xf32>
    %cst_25 = arith.constant dense<0.000000e+00> : vector<2x64xf32>
    %37 = tpu.matmul %35, %36, %cst_25 {dimension_numbers = #tpu.dot_dimension_numbers<[1], [0], [0], [1], [0, 0, 1, 1], [], []>} : vector<2x64xf32>, vector<64x64xf32>, vector<2x64xf32> -> vector<2x64xf32>
    %c0_26 = arith.constant 0 : index
    %c0_27 = arith.constant 0 : index
    %38 = vector.load %arg9[%c0_26, %c0_27] : memref<1x64xf32, #tpu.memory_space<vmem>>, vector<1x64xf32>
    %39 = vector.broadcast %38 : vector<1x64xf32> to vector<2x64xf32>
    %40 = arith.addf %37, %39 : vector<2x64xf32>
    %cst_28 = arith.constant dense<0.000000e+00> : vector<2xf32>
    %41 = vector.multi_reduction <add>, %40, %cst_28 [1] : vector<2x64xf32> to vector<2xf32>
    %42 = vector.shape_cast %41 : vector<2xf32> to vector<2x1xf32>
    %cst_29 = arith.constant 6.400000e+01 : f32
    %43 = vector.broadcast %cst_29 : f32 to vector<2x1xf32>
    %44 = arith.divf %42, %43 : vector<2x1xf32>
    %45 = vector.broadcast %44 : vector<2x1xf32> to vector<2x64xf32>
    %46 = arith.subf %40, %45 : vector<2x64xf32>
    %47 = arith.mulf %46, %46 : vector<2x64xf32>
    %cst_30 = arith.constant dense<0.000000e+00> : vector<2xf32>
    %48 = vector.multi_reduction <add>, %47, %cst_30 [1] : vector<2x64xf32> to vector<2xf32>
    %49 = vector.shape_cast %48 : vector<2xf32> to vector<2x1xf32>
    %cst_31 = arith.constant 6.400000e+01 : f32
    %50 = vector.broadcast %cst_31 : f32 to vector<2x1xf32>
    %51 = arith.divf %49, %50 : vector<2x1xf32>
    %52 = vector.broadcast %44 : vector<2x1xf32> to vector<2x64xf32>
    %53 = arith.subf %40, %52 : vector<2x64xf32>
    %cst_32 = arith.constant 9.99999974E-6 : f32
    %54 = vector.broadcast %cst_32 : f32 to vector<2x1xf32>
    %55 = arith.addf %51, %54 : vector<2x1xf32>
    %56 = math.rsqrt %55 : vector<2x1xf32>
    %57 = vector.broadcast %56 : vector<2x1xf32> to vector<2x64xf32>
    %58 = arith.mulf %53, %57 : vector<2x64xf32>
    %c0_33 = arith.constant 0 : index
    %c0_34 = arith.constant 0 : index
    %59 = vector.load %arg10[%c0_33, %c0_34] : memref<1x64xf32, #tpu.memory_space<vmem>>, vector<1x64xf32>
    %60 = vector.broadcast %59 : vector<1x64xf32> to vector<2x64xf32>
    %61 = arith.mulf %58, %60 : vector<2x64xf32>
    %c0_35 = arith.constant 0 : index
    %c0_36 = arith.constant 0 : index
    %62 = vector.load %arg11[%c0_35, %c0_36] : memref<64x128xf32, #tpu.memory_space<vmem>>, vector<64x128xf32>
    %cst_37 = arith.constant dense<0.000000e+00> : vector<2x128xf32>
    %63 = tpu.matmul %61, %62, %cst_37 {dimension_numbers = #tpu.dot_dimension_numbers<[1], [0], [0], [1], [0, 0, 1, 1], [], []>} : vector<2x64xf32>, vector<64x128xf32>, vector<2x128xf32> -> vector<2x128xf32>
    %c0_38 = arith.constant 0 : index
    %c0_39 = arith.constant 0 : index
    %64 = vector.load %arg12[%c0_38, %c0_39] : memref<2x128xf32, #tpu.memory_space<vmem>>, vector<2x128xf32>
    tpu.vector_store %arg12[%c0_38, %c0_39], %63 {strides = array<i32>} : memref<2x128xf32, #tpu.memory_space<vmem>>, vector<2x128xf32>,
    return
  }
  func.func @transform_0(%arg0: i32) -> (i32, i32) {
    %c0_i32 = arith.constant 0 : i32
    %c0_i32_0 = arith.constant 0 : i32
    return %arg0, %c0_i32 : i32, i32
  }
  func.func @transform_1(%arg0: i32) -> (i32, i32) {
    %c0_i32 = arith.constant 0 : i32
    %c0_i32_0 = arith.constant 0 : i32
    %c0_i32_1 = arith.constant 0 : i32
    return %c0_i32, %c0_i32_0 : i32, i32
  }
  func.func @transform_2(%arg0: i32) -> (i32, i32) {
    %c0_i32 = arith.constant 0 : i32
    %c0_i32_0 = arith.constant 0 : i32
    %c0_i32_1 = arith.constant 0 : i32
    return %c0_i32, %c0_i32_0 : i32, i32
  }
  func.func @transform_3(%arg0: i32) -> (i32, i32) {
    %c0_i32 = arith.constant 0 : i32
    %c0_i32_0 = arith.constant 0 : i32
    %c0_i32_1 = arith.constant 0 : i32
    return %c0_i32, %c0_i32_0 : i32, i32
  }
  func.func @transform_4(%arg0: i32) -> (i32, i32) {
    %c0_i32 = arith.constant 0 : i32
    %c0_i32_0 = arith.constant 0 : i32
    %c0_i32_1 = arith.constant 0 : i32
    return %c0_i32, %c0_i32_0 : i32, i32
  }
  func.func @transform_5(%arg0: i32) -> (i32, i32) {
    %c0_i32 = arith.constant 0 : i32
    %c0_i32_0 = arith.constant 0 : i32
    %c0_i32_1 = arith.constant 0 : i32
    return %c0_i32, %c0_i32_0 : i32, i32
  }
  func.func @transform_6(%arg0: i32) -> (i32, i32) {
    %c0_i32 = arith.constant 0 : i32
    %c0_i32_0 = arith.constant 0 : i32
    %c0_i32_1 = arith.constant 0 : i32
    return %c0_i32, %c0_i32_0 : i32, i32
  }
  func.func @transform_7(%arg0: i32) -> (i32, i32) {
    %c0_i32 = arith.constant 0 : i32
    %c0_i32_0 = arith.constant 0 : i32
    %c0_i32_1 = arith.constant 0 : i32
    return %c0_i32, %c0_i32_0 : i32, i32
  }
  func.func @transform_8(%arg0: i32) -> (i32, i32) {
    %c0_i32 = arith.constant 0 : i32
    %c0_i32_0 = arith.constant 0 : i32
    %c0_i32_1 = arith.constant 0 : i32
    return %c0_i32, %c0_i32_0 : i32, i32
  }
  func.func @transform_9(%arg0: i32) -> (i32, i32) {
    %c0_i32 = arith.constant 0 : i32
    %c0_i32_0 = arith.constant 0 : i32
    %c0_i32_1 = arith.constant 0 : i32
    return %c0_i32, %c0_i32_0 : i32, i32
  }
  func.func @transform_10(%arg0: i32) -> (i32, i32) {
    %c0_i32 = arith.constant 0 : i32
    %c0_i32_0 = arith.constant 0 : i32
    %c0_i32_1 = arith.constant 0 : i32
    return %c0_i32, %c0_i32_0 : i32, i32
  }
  func.func @transform_11(%arg0: i32) -> (i32, i32) {
    %c0_i32 = arith.constant 0 : i32
    %c0_i32_0 = arith.constant 0 : i32
    return %arg0, %c0_i32 : i32, i32
  }
}

</mosaic_0001>

<bundles_post_ra>
// kernel: tpu_custom_call.1
= control target key start
LH: loop header
LB: loop body
LE: loop exit
PB: predicated region body
PF: predicated region fallthrough
CT: control target
= control target key end

     0   :  { %16 = vsyncpa [#allocation3], 0  ;;  %s902_s0 = inlined_call_operand.hbm [shape: f32[16,32], index: 0, kind: input, shape index: {}]   ;;  %s903_s1 = inlined_call_operand.hbm [shape: f32[32,64], index: 1, kind: input, shape index: {}]   ;;  %s904_s2 = inlined_call_operand.vmem [shape: f32[1,64], index: 2, kind: input, shape index: {}]   ;;  %s905_s3 = inlined_call_operand.hbm [shape: f32[64,64], index: 3, kind: input, shape index: {}]   ;;  %s906_s4 = inlined_call_operand.vmem [shape: f32[1,64], index: 4, kind: input, shape index: {}]   ;;  %s907_s5 = inlined_call_operand.hbm [shape: f32[64,64], index: 5, kind: input, shape index: {}]   ;;  %s908_s6 = inlined_call_operand.vmem [shape: f32[1,64], index: 6, kind: input, shape index: {}]   ;;  %s909_s7 = inlined_call_operand.hbm [shape: f32[64,64], index: 7, kind: input, shape index: {}]   ;;  %s910_s8 = inlined_call_operand.vmem [shape: f32[1,64], index: 8, kind: input, shape index: {}]   ;;  %s911_s9 = inlined_call_operand.vmem [shape: f32[1,64], index: 9, kind: input, shape index: {}]   ;;  %s912_s10 = inlined_call_operand.hbm [shape: f32[64,128], index: 10, kind: input, shape index: {}]   ;;  %s913_s11 = inlined_call_operand.hbm [shape: f32[2,128], index: 11, kind: output, shape index: {}]  }
   0x1   :  { %17 = vsyncpa [#allocation6], 0 }
   0x2   :  { %18 = vsyncpa [#allocation9], 0 }
   0x3   :  { %19 = vsyncpa [#allocation12], 0 }
   0x4   :  { %20 = vsyncpa [#allocation4], 0  ;;  %s38_s19 = sshll.u32 %s903_s1, 4  ;;  %s739_s20 = smov [#allocation5]   ;;  %s39_s19 = int_to_ptr.hbm [resolvable:$true] %s38_s19 }
   0x5   :  { %s40_s21 = sshll.u32 %s739_s20, 4  ;;  %s68_s24 = sshll.u32 %s907_s5, 4  ;;  %s41_s21 = int_to_ptr.vmem [resolvable:$true] %s40_s21  ;;  %s69_s24 = int_to_ptr.hbm [resolvable:$true] %s68_s24 }
   0x6   :  { %s740_s25 = smov 128   ;;  %s741_s26 = smov 8  }
   0x7   :  { %46 = dma.hbm_to_vmem [thread:$0]  %s39_s19, 512, %s41_s21, [#allocation6], %s740_s25, %s740_s25, %s741_s26  }
   0x8   :  { %s742_s27 = smov [#allocation8]   ;;  %s25_s1 = sshll.u32 %s902_s0, 4  ;;  %s26_s1 = int_to_ptr.hbm [resolvable:$true] %s25_s1 }
   0x9   :  { %s70_s28 = sshll.u32 %s742_s27, 4  ;;  %s53_s13 = sshll.u32 %s905_s3, 4  ;;  %s71_s28 = int_to_ptr.vmem [resolvable:$true] %s70_s28  ;;  %s54_s13 = int_to_ptr.hbm [resolvable:$true] %s53_s13 }
   0xa   :  { %76 = dma.hbm_to_vmem [thread:$0]  %s69_s24, 1024, %s71_s28, [#allocation9], %s740_s25, %s740_s25, %s741_s26  }
   0xb   :  { %s743_s14 = smov [#allocation2]   ;;  %s744_s16 = smov [#allocation7]  }
   0xc   :  { %s27_s15 = sshll.u32 %s743_s14, 4  ;;  %s55_s0 = sshll.u32 %s744_s16, 4  ;;  %s28_s15 = int_to_ptr.vmem [resolvable:$true] %s27_s15  ;;  %s56_s0 = int_to_ptr.vmem [resolvable:$true] %s55_s0 }
   0xd   :  { %33 = dma.hbm_to_vmem [thread:$0]  %s26_s1, 256, %s28_s15, [#allocation3], %s740_s25, %s740_s25, %s741_s26  }
   0xe   :  { %s83_s19 = sshll.u32 %s909_s7, 4  ;;  %s100_s21 = sshll.u32 %s912_s10, 4  ;;  %s84_s19 = int_to_ptr.hbm [resolvable:$true] %s83_s19  ;;  %s101_s21 = int_to_ptr.hbm [resolvable:$true] %s100_s21 }
   0xf   :  { %61 = dma.hbm_to_vmem [thread:$0]  %s54_s13, 1024, %s56_s0, [#allocation6], %s740_s25, %s740_s25, %s741_s26  }
  0x10   :  { %s745_s22 = smov [#allocation10]   ;;  %s746_s24 = smov [#allocation11]  }
  0x11   :  { %s85_s23 = sshll.u32 %s745_s22, 4  ;;  %s102_s7 = sshll.u32 %s746_s24, 4  ;;  %s86_s23 = int_to_ptr.vmem [resolvable:$true] %s85_s23  ;;  %s103_s7 = int_to_ptr.vmem [resolvable:$true] %s102_s7 }
  0x12   :  { %91 = dma.hbm_to_vmem [thread:$0]  %s84_s19, 1024, %s86_s23, [#allocation9], %s740_s25, %s740_s25, %s741_s26  }
  0x13   :  { %108 = dma.hbm_to_vmem [thread:$0]  %s101_s21, 1024, %s103_s7, [#allocation12], %s740_s25, %s740_s25, %s741_s26  }
  0x14   :  { %729 = dma.done.wait [#allocation3], 256  }
  0x15   :  { %730 = vsyncadd [#allocation3], 4294967040 }
  0x16   :  { %731 = dma.done.wait [#allocation6], 1536  }
  0x17   :  { %732 = vsyncadd [#allocation6], 4294965760 }
  0x18   :  { %733 = dma.done.wait [#allocation9], 2048  }
  0x19   :  { %734 = vsyncadd [#allocation9], 4294965248 }
  0x1a   :  { %735 = dma.done.wait [#allocation12], 1024  }
  0x1b   :  { %736 = vsyncadd [#allocation12], 4294966272  ;;  %v138_v0 = vld [vmem:[#allocation5 + $0x18] sm:$0xff]  ;;  %v137_v1 = vld [vmem:[#allocation5 + $0x10] sm:$0xff]  ;;  %vm143_vm0 = vcmask 261120   ;;  %vm261_vm6 = vcmask 523264  }
  0x1c   :  { %162 = vmatpush.msra.mxu0 %v138_v0  ;;  %v136_v2 = vld [vmem:[#allocation5 + $0x8] sm:$0xff]  ;;  %v135_v3 = vld [vmem:[#allocation5] sm:$0xff]  ;;  %v133_v4 = vld [vmem:[#allocation2] sm:$0xff]  ;;  %vm299_vm11 = vcmask 1041409   ;;  %s749_s30 = smov [#allocation13]   ;;  %s511_s13 = sshll.u32 %s913_s11, 4  ;;  %s512_s13 = int_to_ptr.hbm [resolvable:$true] %s511_s13 }
  0x1d   :  { %v134_v5 = vld [vmem:[#allocation2 + $0x8] sm:$0xff]  ;;  %v544_v6 = vld [vmem:[%s904_s2] ss:$0 sm:$0xff]  ;;  %v290_v56 = vld [vmem:[#allocation7 + $0x28] sm:$0xff]  ;;  %s509_s1 = sshll.u32 %s749_s30, 4  ;;  %s510_s1 = int_to_ptr.vmem [resolvable:$true] %s509_s1 }
  0x1e   :  { %163 = vmatpush.msra.mxu0 %v137_v1  ;;  %v292_v48 = vld [vmem:[#allocation7 + $0x38] sm:$0xff]  ;;  %v291_v51 = vld [vmem:[#allocation7 + $0x30] sm:$0xff]  ;;  %v289_v59 = vld [vmem:[#allocation7 + $0x20] sm:$0xff] }
  0x1f   :  { %311 = vmatpush.msra.mxu1 %v292_v48  ;;  %v288_v60 = vld [vmem:[#allocation7 + $0x18] sm:$0xff]  ;;  %v287_v1 = vld [vmem:[#allocation7 + $0x10] sm:$0xff] }
  0x20   :  { %164 = vmatpush.msra.mxu0 %v136_v2 }
  0x21   :  { %312 = vmatpush.msra.mxu1 %v291_v51 }
  0x22   :  { %165 = vmatpush.msra.mxu0 %v135_v3 }
  0x23   :  { %524 = vmatmul.msk.f32.vlgmr.msra.gmra.mxu0 %vm143_vm0, %v133_v4  ;;  %313 = vmatpush.msra.mxu1 %v290_v56  ;;  %v286_v4 = vld [vmem:[#allocation7 + $0x8] sm:$0xff] }
  0x25   :  { %314 = vmatpush.msra.mxu1 %v289_v59 }
  0x27   :  { %315 = vmatpush.msra.mxu1 %v288_v60 }
  0x29   :  { %316 = vmatpush.msra.mxu1 %v287_v1  ;;  %v545_v1 = vld [vmem:[%s906_s4] ss:$0 sm:$0xff] }
  0x2b   :  { %525 = vmatmul.msk.f32.gmra.mxu0 %vm143_vm0, %v134_v5  ;;  %317 = vmatpush.msra.mxu1 %v286_v4  ;;  %v546_v4 = vld [vmem:[%s908_s6] ss:$0 sm:$0xff]  ;;  %vm437_vm0 = vcmask 517120  }
  0xa0   :  { %v167_v7 = vpop.f32.mrf.mxu0 }
  0xa1   :  { %v849_v8 = vadd.f32 %v544_v6, %v167_v7 }
  0xa3   :  { %v852_v9 = vmul.f32 0.70710677, %v849_v8 }
  0xa5   :  { %v177_v10 = vmul.f32 %v852_v9, %v852_v9 }
  0xa7   :  { %v178_v11 = vmin.f32 %v177_v10, 16.0 }
  0xa8   :  { %v170_v12 = vpop.f32.mrf.mxu0 }
  0xa9   :  { %v179_v13 = vmul.f32 2.1237322e-06, %v178_v11  ;;  %v190_v14 = vmul.f32 3.8918573e-05, %v178_v11  ;;  %v856_v15 = vadd.f32 %v544_v6, %v170_v12 }
  0xab   :  { %v180_v16 = vadd.f32 0.00028619796, %v179_v13  ;;  %v191_v17 = vadd.f32 0.001143296, %v190_v14  ;;  %v859_v18 = vmul.f32 0.70710677, %v856_v15 }
  0xad   :  { %v181_v19 = vmul.f32 %v180_v16, %v178_v11  ;;  %v192_v20 = vmul.f32 %v191_v17, %v178_v11  ;;  %v217_v21 = vmul.f32 %v859_v18, %v859_v18 }
  0xaf   :  { %v193_v22 = vadd.f32 0.014752088, %v192_v20  ;;  %v182_v23 = vadd.f32 0.0036580483, %v181_v19  ;;  %v863_v24 = vmin.f32 %v217_v21, 16.0  ;;  %v330_v19 = vld [vmem:[#allocation8 + $0x38] sm:$0xff] }
  0xb0   :  { %v329_v20 = vld [vmem:[#allocation8 + $0x30] sm:$0xff]  ;;  %346 = vmatpush.msra.mxu2 %v330_v19 }
  0xb1   :  { %v194_v25 = vmul.f32 %v193_v22, %v178_v11  ;;  %v219_v26 = vmul.f32 2.1237322e-06, %v863_v24  ;;  %v230_v27 = vmul.f32 3.8918573e-05, %v863_v24  ;;  %v183_v29 = vmul.f32 %v182_v23, %v178_v11 }
  0xb2   :  { %v747_v23 = vmov 8.0   ;;  %347 = vmatpush.msra.mxu2 %v329_v20  ;;  %v407_v20 = vld [vmem:[#allocation10 + $0x28] sm:$0xff] }
  0xb3   :  { %v195_v28 = vadd.f32 0.112945676, %v194_v25  ;;  %v220_v30 = vadd.f32 0.00028619796, %v219_v26  ;;  %v231_v31 = vadd.f32 0.001143296, %v230_v27 }
  0xb4   :  { %v184_v36 = vadd.f32 0.05243302, %v183_v29  ;;  %v328_v27 = vld [vmem:[#allocation8 + $0x28] sm:$0xff] }
  0xb5   :  { %v196_v32 = vmul.f32 %v195_v28, %v178_v11  ;;  %v221_v33 = vmul.f32 %v220_v30, %v863_v24  ;;  %v232_v34 = vmul.f32 %v231_v31, %v863_v24  ;;  %v173_v28 = vmul.f32 0.5, %v849_v8  ;;  %v327_v30 = vld [vmem:[#allocation8 + $0x20] sm:$0xff]  ;;  %348 = vmatpush.msra.mxu2 %v328_v27 }
  0xb6   :  { %v185_v42 = vmul.f32 %v184_v36, %v178_v11 }
  0xb7   :  { %v197_v35 = vadd.f32 0.4994258, %v196_v32  ;;  %v233_v37 = vadd.f32 0.014752088, %v232_v34  ;;  %v222_v39 = vadd.f32 0.0036580483, %v221_v33  ;;  %349 = vmatpush.msra.mxu2 %v327_v30 }
  0xb8   :  { %v186_v46 = vadd.f32 0.18741608, %v185_v42  ;;  %v402_v30 = vld [vmem:[#allocation10] sm:$0xff] }
  0xb9   :  { %v198_v38 = vmul.f32 %v197_v35, %v178_v11  ;;  %v234_v40 = vmul.f32 %v233_v37, %v863_v24  ;;  %v223_v44 = vmul.f32 %v222_v39, %v863_v24  ;;  %v326_v35 = vld [vmem:[#allocation8 + $0x18] sm:$0xff] }
  0xba   :  { %v187_v53 = vmul.f32 %v186_v46, %v178_v11  ;;  %v285_v11 = vld [vmem:[#allocation7] sm:$0xff]  ;;  %350 = vmatpush.msra.mxu2 %v326_v35 }
  0xbb   :  { %v199_v41 = vadd.f32 1.0, %v198_v38  ;;  %v235_v43 = vadd.f32 0.112945676, %v234_v40  ;;  %v224_v49 = vadd.f32 0.05243302, %v223_v44  ;;  %318 = vmatpush.msra.mxu1 %v285_v11  ;;  %v325_v40 = vld [vmem:[#allocation8 + $0x10] sm:$0xff] }
  0xbc   :  { %v188_v62 = vadd.f32 1.1283791, %v187_v53  ;;  %351 = vmatpush.msra.mxu2 %v325_v40  ;;  %v174_v44 = vmul.f32 0.5, %v856_v15 }
  0xbd   :  { %549 = vrcp.f32 %v199_v41  ;;  %v236_v45 = vmul.f32 %v235_v43, %v863_v24  ;;  %v225_v57 = vmul.f32 %v224_v49, %v863_v24  ;;  %v211_v61 = vand.u32 2147483648, %v199_v41 }
  0xbe   :  { %v209_v0 = vand.u32 2147483647, %v199_v41  ;;  %vm205_vm2 = vweird.f32 %v199_v41  ;;  %v189_v7 = vmul.f32 %v188_v62, %v852_v9 }
  0xbf   :  { %v237_v47 = vadd.f32 0.4994258, %v236_v45  ;;  %v226_v2 = vadd.f32 0.18741608, %v225_v57  ;;  %v212_v5 = vor.u32 1.1754944e-38, %v211_v61 }
  0xc0   :  { %vm210_vm4 = vcmp.eq.f32.partialorder %v209_v0, 8.507059e+37  ;;  %v323_v0 = vld [vmem:[#allocation8] sm:$0xff] }
  0xc1   :  { %v238_v50 = vmul.f32 %v237_v47, %v863_v24  ;;  %v227_v13 = vmul.f32 %v226_v2, %v863_v24 }
  0xc3   :  { %v550_v52 = vpop.eup %549  ;;  %v239_v55 = vadd.f32 1.0, %v238_v50  ;;  %v228_v25 = vadd.f32 1.1283791, %v227_v13 }
  0xc4   :  { %v201_v54 = vmul.f32 %v550_v52, %v199_v41  ;;  %vm206_vm1 = vweird.f32 %v550_v52 }
  0xc5   :  { %551 = vrcp.f32 %v239_v55  ;;  %vm207_vm3 = vmor %vm205_vm2, %vm206_vm1  ;;  %v251_v22 = vand.u32 2147483648, %v239_v55  ;;  %v249_v26 = vand.u32 2147483647, %v239_v55  ;;  %vm245_vm7 = vweird.f32 %v239_v55 }
  0xc6   :  { %v202_v58 = vsub.f32 1.0, %v201_v54  ;;  %553 = vrcp.f32 %v747_v23  ;;  %v229_v33 = vmul.f32 %v228_v25, %v859_v18  ;;  %v406_v23 = vld [vmem:[#allocation10 + $0x20] sm:$0xff]  ;;  %v405_v25 = vld [vmem:[#allocation10 + $0x18] sm:$0xff] }
  0xc7   :  { %v252_v32 = vor.u32 1.1754944e-38, %v251_v22  ;;  %vm250_vm9 = vcmp.eq.f32.partialorder %v249_v26, 8.507059e+37  ;;  %v404_v26 = vld [vmem:[#allocation10 + $0x10] sm:$0xff] }
  0xc8   :  { %v203_v63 = vmul.f32 %v550_v52, %v202_v58 }
  0xca   :  { %v204_v3 = vadd.f32 %v550_v52, %v203_v63  ;;  %v324_v63 = vld [vmem:[#allocation8 + $0x8] sm:$0xff] }
  0xcb   :  { %v552_v6 = vpop.eup %551  ;;  %352 = vmatpush.msra.mxu2 %v324_v63 }
  0xcc   :  { %v208_v10 = vsel %vm207_vm3, %v550_v52, %v204_v3  ;;  %v241_v14 = vmul.f32 %v552_v6, %v239_v55  ;;  %vm246_vm5 = vweird.f32 %v552_v6  ;;  %v554_v36 = vpop.eup %553 }
  0xcd   :  { %v213_v12 = vsel %vm210_vm4, %v212_v5, %v208_v10  ;;  %vm247_vm8 = vmor %vm245_vm7, %vm246_vm5  ;;  %v277_v43 = vmul.f32 8.0, %v554_v36  ;;  %vm281_vm10 = vweird.f32 %v554_v36  ;;  %353 = vmatpush.msra.mxu2 %v323_v0 }
  0xce   :  { %v214_v16 = vmul.f32 %v213_v12, %v189_v7  ;;  %v242_v17 = vsub.f32 1.0, %v241_v14  ;;  %v409_v12 = vld [vmem:[#allocation10 + $0x38] sm:$0xff] }
  0xcf   :  { %v278_v47 = vsub.f32 1.0, %v277_v43  ;;  %425 = vmatpush.msra.mxu3 %v409_v12  ;;  %v475_v12 = vld [vmem:[#allocation11 + $0x18] sm:$0xff] }
  0xd0   :  { %v526_v21 = vclamps-f32 %v214_v16, 1.0  ;;  %v243_v9 = vmul.f32 %v552_v6, %v242_v17  ;;  %v408_v16 = vld [vmem:[#allocation10 + $0x30] sm:$0xff] }
  0xd1   :  { %v279_v51 = vmul.f32 %v554_v36, %v278_v47  ;;  %426 = vmatpush.msra.mxu3 %v408_v16  ;;  %v472_v16 = vld [vmem:[#allocation11] sm:$0xff] }
  0xd2   :  { %v257_v24 = vadd.f32 1.0, %v526_v21  ;;  %v244_v29 = vadd.f32 %v552_v6, %v243_v9 }
  0xd3   :  { %v280_v55 = vadd.f32 %v554_v36, %v279_v51  ;;  %427 = vmatpush.msra.mxu3 %v407_v20 }
  0xd4   :  { %v259_v31 = vmul.f32 %v257_v24, %v173_v28  ;;  %v248_v34 = vsel %vm247_vm8, %v552_v6, %v244_v29  ;;  %v403_v24 = vld [vmem:[#allocation10 + $0x8] sm:$0xff] }
  0xd5   :  { %v253_v38 = vsel %vm250_vm9, %v252_v32, %v248_v34  ;;  %v282_v59 = vsel %vm281_vm10, %v554_v36, %v280_v55  ;;  %428 = vmatpush.msra.mxu3 %v406_v23  ;;  %v547_v55 = vld [vmem:[%s910_s8] ss:$0 sm:$0xff] }
  0xd6   :  { %v262_v37 = vsel %vm261_vm6, %v259_v31, 0.0  ;;  %v254_v39 = vmul.f32 %v253_v38, %v229_v33 }
  0xd7   :  { %v263_v8 = vrot.slane %v262_v37, 4  ;;  %429 = vmatpush.msra.mxu3 %v405_v25 }
  0xd8   :  { %v527_v42 = vclamps-f32 %v254_v39, 1.0 }
  0xd9   :  { %v264_v41 = vadd.f32 %v263_v8, %v262_v37  ;;  %430 = vmatpush.msra.mxu3 %v404_v26 }
  0xda   :  { %v258_v45 = vadd.f32 1.0, %v527_v42 }
  0xdb   :  { %v265_v18 = vrot.slane %v264_v41, 2  ;;  %431 = vmatpush.msra.mxu3 %v403_v24 }
  0xdc   :  { %v260_v46 = vmul.f32 %v258_v45, %v174_v44 }
  0xdd   :  { %v266_v49 = vadd.f32 %v265_v18, %v264_v41  ;;  %432 = vmatpush.msra.mxu3 %v402_v30 }
  0xde   :  { %v269_v48 = vsel %vm261_vm6, %v260_v46, 0.0 }
  0xdf   :  { %v270_v50 = vrot.slane %v269_v48, 4  ;;  %v267_v54 = vrot.slane %v266_v49, 1 }
  0xe1   :  { %v271_v52 = vadd.f32 %v270_v50, %v269_v48  ;;  %v268_v57 = vadd.f32 %v267_v54, %v266_v49 }
  0xe3   :  { %v272_v53 = vrot.slane %v271_v52, 2  ;;  %v283_v15 = vmul.f32 %v282_v59, %v268_v57 }
  0xe5   :  { %v273_v56 = vadd.f32 %v272_v53, %v271_v52 }
  0xe7   :  { %v274_v58 = vrot.slane %v273_v56, 1 }
  0xe9   :  { %v275_v60 = vadd.f32 %v274_v58, %v273_v56 }
  0xeb   :  { %v284_v61 = vmul.f32 %v282_v59, %v275_v60  ;;  %v748_v59 = vmov 64.0  }
  0xed   :  { %v300_v62 = vsel %vm299_vm11, %v284_v61, %v283_v15 }
  0xee   :  { %528 = vmatmul.msk.f32.vlgmr.msra.gmra.mxu1 %vm261_vm6, %v300_v62 }
 0x16b   :  { %v320_v2 = vpop.f32.mrf.mxu1 }
 0x16c   :  { %v321_v3 = vadd.f32 %v545_v1, %v320_v2 }
 0x16e   :  { %529 = vmatmul.msk.f32.vlgmr.msra.gmra.mxu2 %vm261_vm6, %v321_v3 }
 0x1f1   :  { %v355_v5 = vpop.f32.mrf.mxu2 }
 0x1f2   :  { %v356_v6 = vadd.f32 %v546_v4, %v355_v5 }
 0x1f4   :  { %v359_v7 = vmul.f32 0.70710677, %v356_v6  ;;  %v358_v52 = vmul.f32 0.5, %v356_v6  ;;  %v479_v6 = vld [vmem:[#allocation11 + $0x38] sm:$0xff] }
 0x1f5   :  { %491 = vmatpush.msrb.mxu0 %v479_v6 }
 0x1f6   :  { %v360_v10 = vmul.f32 %v359_v7, %v359_v7 }
 0x1f8   :  { %v361_v11 = vmin.f32 %v360_v10, 16.0  ;;  %v477_v10 = vld [vmem:[#allocation11 + $0x28] sm:$0xff] }
 0x1fa   :  { %v362_v13 = vmul.f32 2.1237322e-06, %v361_v11  ;;  %v373_v14 = vmul.f32 3.8918573e-05, %v361_v11 }
 0x1fc   :  { %v363_v17 = vadd.f32 0.00028619796, %v362_v13  ;;  %v374_v19 = vadd.f32 0.001143296, %v373_v14  ;;  %v474_v13 = vld [vmem:[#allocation11 + $0x10] sm:$0xff]  ;;  %v473_v14 = vld [vmem:[#allocation11 + $0x8] sm:$0xff] }
 0x1fe   :  { %v364_v21 = vmul.f32 %v363_v17, %v361_v11  ;;  %v375_v22 = vmul.f32 %v374_v19, %v361_v11 }
 0x200   :  { %v376_v9 = vadd.f32 0.014752088, %v375_v22  ;;  %v365_v27 = vadd.f32 0.0036580483, %v364_v21 }
 0x202   :  { %v377_v28 = vmul.f32 %v376_v9, %v361_v11  ;;  %v366_v31 = vmul.f32 %v365_v27, %v361_v11  ;;  %v548_v27 = vld [vmem:[%s911_s9] ss:$0 sm:$0xff] }
 0x204   :  { %v378_v29 = vadd.f32 0.112945676, %v377_v28  ;;  %v367_v34 = vadd.f32 0.05243302, %v366_v31 }
 0x206   :  { %v379_v32 = vmul.f32 %v378_v29, %v361_v11  ;;  %v368_v37 = vmul.f32 %v367_v34, %v361_v11 }
 0x208   :  { %v380_v33 = vadd.f32 0.4994258, %v379_v32  ;;  %v369_v38 = vadd.f32 0.18741608, %v368_v37 }
 0x20a   :  { %v381_v35 = vmul.f32 %v380_v33, %v361_v11  ;;  %v370_v39 = vmul.f32 %v369_v38, %v361_v11  ;;  %v476_v11 = vld [vmem:[#allocation11 + $0x20] sm:$0xff] }
 0x20c   :  { %v382_v36 = vadd.f32 1.0, %v381_v35  ;;  %v371_v43 = vadd.f32 1.1283791, %v370_v39 }
 0x20e   :  { %555 = vrcp.f32 %v382_v36  ;;  %v394_v42 = vand.u32 2147483648, %v382_v36  ;;  %v392_v45 = vand.u32 2147483647, %v382_v36  ;;  %vm388_vm13 = vweird.f32 %v382_v36 }
 0x20f   :  { %v372_v47 = vmul.f32 %v371_v43, %v359_v7  ;;  %557 = vrcp.f32 %v748_v59  ;;  %v478_v7 = vld [vmem:[#allocation11 + $0x30] sm:$0xff] }
 0x210   :  { %v395_v46 = vor.u32 1.1754944e-38, %v394_v42  ;;  %vm393_vm15 = vcmp.eq.f32.partialorder %v392_v45, 8.507059e+37  ;;  %492 = vmatpush.msrb.mxu0 %v478_v7 }
 0x212   :  { %493 = vmatpush.msrb.mxu0 %v477_v10 }
 0x214   :  { %v556_v8 = vpop.eup %555  ;;  %494 = vmatpush.msrb.mxu0 %v476_v11 }
 0x215   :  { %v384_v40 = vmul.f32 %v556_v8, %v382_v36  ;;  %vm389_vm12 = vweird.f32 %v556_v8  ;;  %v558_v60 = vpop.eup %557 }
 0x216   :  { %vm390_vm14 = vmor %vm388_vm13, %vm389_vm12  ;;  %v442_v15 = vmul.f32 64.0, %v558_v60  ;;  %vm446_vm1 = vweird.f32 %v558_v60  ;;  %495 = vmatpush.msrb.mxu0 %v475_v12 }
 0x217   :  { %v385_v41 = vsub.f32 1.0, %v384_v40 }
 0x218   :  { %v443_v61 = vsub.f32 1.0, %v442_v15  ;;  %496 = vmatpush.msrb.mxu0 %v474_v13 }
 0x219   :  { %v386_v44 = vmul.f32 %v556_v8, %v385_v41 }
 0x21a   :  { %v444_v62 = vmul.f32 %v558_v60, %v443_v61  ;;  %497 = vmatpush.msrb.mxu0 %v473_v14 }
 0x21b   :  { %v387_v18 = vadd.f32 %v556_v8, %v386_v44 }
 0x21c   :  { %v445_v63 = vadd.f32 %v558_v60, %v444_v62  ;;  %498 = vmatpush.msrb.mxu0 %v472_v16 }
 0x21d   :  { %v391_v48 = vsel %vm390_vm14, %v556_v8, %v387_v18 }
 0x21e   :  { %v396_v49 = vsel %vm393_vm15, %v395_v46, %v391_v48  ;;  %v447_v0 = vsel %vm446_vm1, %v558_v60, %v445_v63 }
 0x21f   :  { %v397_v50 = vmul.f32 %v396_v49, %v372_v47 }
 0x221   :  { %v530_v51 = vclamps-f32 %v397_v50, 1.0 }
 0x223   :  { %v400_v53 = vadd.f32 1.0, %v530_v51 }
 0x225   :  { %v401_v54 = vmul.f32 %v400_v53, %v358_v52 }
 0x227   :  { %531 = vmatmul.msk.f32.vlgmr.msra.gmra.mxu3 %vm261_vm6, %v401_v54 }
 0x2aa   :  { %v434_v56 = vpop.f32.mrf.mxu3 }
 0x2ab   :  { %v435_v57 = vadd.f32 %v547_v55, %v434_v56 }
 0x2ad   :  { %v438_v58 = vsel %vm437_vm0, %v435_v57, 0.0 }
 0x2ae   :  { %439 = vadd.xlane.f32.xlu0 %v438_v58 }
 0x321   :  { %v440_v1 = vpop.xlane.xlu0 %439 }
 0x322   :  { %v448_v2 = vmul.f32 %v447_v0, %v440_v1 }
 0x324   :  { %v449_v3 = vsub.f32 %v435_v57, %v448_v2 }
 0x326   :  { %v450_v4 = vmul.f32 %v449_v3, %v449_v3 }
 0x328   :  { %v451_v5 = vsel %vm437_vm0, %v450_v4, 0.0 }
 0x329   :  { %452 = vadd.xlane.f32.xlu0 %v451_v5 }
 0x39c   :  { %v453_v17 = vpop.xlane.xlu0 %452 }
 0x39d   :  { %v454_v19 = vmul.f32 %v453_v17, %v447_v0 }
 0x39f   :  { %v455_v20 = vadd.f32 1e-05, %v454_v19 }
 0x3a1   :  { %559 = vrsqrt.f32 %v455_v20  ;;  %vm462_vm3 = vweird.f32 %v455_v20 }
 0x3a7   :  { %v560_v21 = vpop.eup %559 }
 0x3a8   :  { %v457_v22 = vmul.f32 %v560_v21, %v455_v20  ;;  %vm463_vm2 = vweird.f32 %v560_v21 }
 0x3a9   :  { %vm464_vm4 = vmor %vm462_vm3, %vm463_vm2 }
 0x3aa   :  { %v458_v23 = vmul.f32 %v560_v21, %v457_v22 }
 0x3ac   :  { %v459_v25 = vmul.f32 0.5, %v458_v23 }
 0x3ae   :  { %v460_v9 = vsub.f32 1.5, %v459_v25 }
 0x3b0   :  { %v461_v26 = vmul.f32 %v560_v21, %v460_v9 }
 0x3b2   :  { %v465_v28 = vsel %vm464_vm4, %v560_v21, %v461_v26 }
 0x3b3   :  { %v466_v24 = vmul.f32 %v465_v28, %v449_v3 }
 0x3b5   :  { %v471_v29 = vmul.f32 %v548_v27, %v466_v24 }
 0x3b7   :  { %532 = vmatmul.msk.f32.vlgmr.msrb.gmra.mxu0 %vm261_vm6, %v471_v29 }
 0x434   :  { %v500_v30 = vpop.f32.mrf.mxu0 }
 0x435   :  { %503 = vst [vmem:[#allocation13] sm:$0x3] %v500_v30 }
 0x436   :  { %514 = dma.vmem_to_hbm [thread:$0]  %s510_s1, 32, %s512_s13, [#allocation4]  }
 0x437   :  { %737 = dma.done.wait [#allocation4], 32  }
 0x438   :  { %738 = vsyncadd [#allocation4], 4294967264 }
 0x439   :  { %519 = vsyncpa [#allocation3], 1 }
 0x43a   :  { %520 = vsyncpa [#allocation6], 1 }
 0x43b   :  { %521 = vsyncpa [#allocation9], 1 }
 0x43c   :  { %522 = vsyncpa [#allocation12], 1 }
 0x43d   :  { %523 = vsyncpa [#allocation4], 1 }

// kernel: tpu_custom_call.1
= control target key start
LH: loop header
LB: loop body
LE: loop exit
PB: predicated region body
PF: predicated region fallthrough
CT: control target
= control target key end

     0   :  { %16 = vsyncpa [#allocation3], 0  ;;  %s902_s0 = inlined_call_operand.hbm [shape: f32[16,32], index: 0, kind: input, shape index: {}]   ;;  %s903_s1 = inlined_call_operand.hbm [shape: f32[32,64], index: 1, kind: input, shape index: {}]   ;;  %s904_s2 = inlined_call_operand.vmem [shape: f32[1,64], index: 2, kind: input, shape index: {}]   ;;  %s905_s3 = inlined_call_operand.hbm [shape: f32[64,64], index: 3, kind: input, shape index: {}]   ;;  %s906_s4 = inlined_call_operand.vmem [shape: f32[1,64], index: 4, kind: input, shape index: {}]   ;;  %s907_s5 = inlined_call_operand.hbm [shape: f32[64,64], index: 5, kind: input, shape index: {}]   ;;  %s908_s6 = inlined_call_operand.vmem [shape: f32[1,64], index: 6, kind: input, shape index: {}]   ;;  %s909_s7 = inlined_call_operand.hbm [shape: f32[64,64], index: 7, kind: input, shape index: {}]   ;;  %s910_s8 = inlined_call_operand.vmem [shape: f32[1,64], index: 8, kind: input, shape index: {}]   ;;  %s911_s9 = inlined_call_operand.vmem [shape: f32[1,64], index: 9, kind: input, shape index: {}]   ;;  %s912_s10 = inlined_call_operand.hbm [shape: f32[64,128], index: 10, kind: input, shape index: {}]   ;;  %s913_s11 = inlined_call_operand.hbm [shape: f32[2,128], index: 11, kind: output, shape index: {}]  }
   0x1   :  { %17 = vsyncpa [#allocation6], 0 }
   0x2   :  { %18 = vsyncpa [#allocation9], 0 }
   0x3   :  { %19 = vsyncpa [#allocation12], 0 }
   0x4   :  { %20 = vsyncpa [#allocation4], 0  ;;  %s38_s19 = sshll.u32 %s903_s1, 4  ;;  %s739_s20 = smov [#allocation5]   ;;  %s39_s19 = int_to_ptr.hbm [resolvable:$true] %s38_s19 }
   0x5   :  { %s40_s21 = sshll.u32 %s739_s20, 4  ;;  %s68_s24 = sshll.u32 %s907_s5, 4  ;;  %s41_s21 = int_to_ptr.vmem [resolvable:$true] %s40_s21  ;;  %s69_s24 = int_to_ptr.hbm [resolvable:$true] %s68_s24 }
   0x6   :  { %s740_s25 = smov 128   ;;  %s741_s26 = smov 8  }
   0x7   :  { %46 = dma.hbm_to_vmem [thread:$0]  %s39_s19, 512, %s41_s21, [#allocation6], %s740_s25, %s740_s25, %s741_s26  }
   0x8   :  { %s742_s27 = smov [#allocation8]   ;;  %s25_s1 = sshll.u32 %s902_s0, 4  ;;  %s26_s1 = int_to_ptr.hbm [resolvable:$true] %s25_s1 }
   0x9   :  { %s70_s28 = sshll.u32 %s742_s27, 4  ;;  %s53_s13 = sshll.u32 %s905_s3, 4  ;;  %s71_s28 = int_to_ptr.vmem [resolvable:$true] %s70_s28  ;;  %s54_s13 = int_to_ptr.hbm [resolvable:$true] %s53_s13 }
   0xa   :  { %76 = dma.hbm_to_vmem [thread:$0]  %s69_s24, 1024, %s71_s28, [#allocation9], %s740_s25, %s740_s25, %s741_s26  }
   0xb   :  { %s743_s14 = smov [#allocation2]   ;;  %s744_s16 = smov [#allocation7]  }
   0xc   :  { %s27_s15 = sshll.u32 %s743_s14, 4  ;;  %s55_s0 = sshll.u32 %s744_s16, 4  ;;  %s28_s15 = int_to_ptr.vmem [resolvable:$true] %s27_s15  ;;  %s56_s0 = int_to_ptr.vmem [resolvable:$true] %s55_s0 }
   0xd   :  { %33 = dma.hbm_to_vmem [thread:$0]  %s26_s1, 256, %s28_s15, [#allocation3], %s740_s25, %s740_s25, %s741_s26  }
   0xe   :  { %s83_s19 = sshll.u32 %s909_s7, 4  ;;  %s100_s21 = sshll.u32 %s912_s10, 4  ;;  %s84_s19 = int_to_ptr.hbm [resolvable:$true] %s83_s19  ;;  %s101_s21 = int_to_ptr.hbm [resolvable:$true] %s100_s21 }
   0xf   :  { %61 = dma.hbm_to_vmem [thread:$0]  %s54_s13, 1024, %s56_s0, [#allocation6], %s740_s25, %s740_s25, %s741_s26  }
  0x10   :  { %s745_s22 = smov [#allocation10]   ;;  %s746_s24 = smov [#allocation11]  }
  0x11   :  { %s85_s23 = sshll.u32 %s745_s22, 4  ;;  %s102_s7 = sshll.u32 %s746_s24, 4  ;;  %s86_s23 = int_to_ptr.vmem [resolvable:$true] %s85_s23  ;;  %s103_s7 = int_to_ptr.vmem [resolvable:$true] %s102_s7 }
  0x12   :  { %91 = dma.hbm_to_vmem [thread:$0]  %s84_s19, 1024, %s86_s23, [#allocation9], %s740_s25, %s740_s25, %s741_s26  }
  0x13   :  { %108 = dma.hbm_to_vmem [thread:$0]  %s101_s21, 1024, %s103_s7, [#allocation12], %s740_s25, %s740_s25, %s741_s26  }
  0x14   :  { %729 = dma.done.wait [#allocation3], 256  }
  0x15   :  { %730 = vsyncadd [#allocation3], 4294967040 }
  0x16   :  { %731 = dma.done.wait [#allocation6], 1536  }
  0x17   :  { %732 = vsyncadd [#allocation6], 4294965760 }
  0x18   :  { %733 = dma.done.wait [#allocation9], 2048  }
  0x19   :  { %734 = vsyncadd [#allocation9], 4294965248 }
  0x1a   :  { %735 = dma.done.wait [#allocation12], 1024  }
  0x1b   :  { %736 = vsyncadd [#allocation12], 4294966272  ;;  %v138_v0 = vld [vmem:[#allocation5 + $0x18] sm:$0xff]  ;;  %v137_v1 = vld [vmem:[#allocation5 + $0x10] sm:$0xff]  ;;  %vm143_vm0 = vcmask 261120   ;;  %vm261_vm6 = vcmask 523264  }
  0x1c   :  { %162 = vmatpush.msra.mxu0 %v138_v0  ;;  %v136_v2 = vld [vmem:[#allocation5 + $0x8] sm:$0xff]  ;;  %v135_v3 = vld [vmem:[#allocation5] sm:$0xff]  ;;  %v133_v4 = vld [vmem:[#allocation2] sm:$0xff]  ;;  %vm299_vm11 = vcmask 1041409   ;;  %s749_s30 = smov [#allocation13]   ;;  %s511_s13 = sshll.u32 %s913_s11, 4  ;;  %s512_s13 = int_to_ptr.hbm [resolvable:$true] %s511_s13 }
  0x1d   :  { %v134_v5 = vld [vmem:[#allocation2 + $0x8] sm:$0xff]  ;;  %v544_v6 = vld [vmem:[%s904_s2] ss:$0 sm:$0xff]  ;;  %v290_v56 = vld [vmem:[#allocation7 + $0x28] sm:$0xff]  ;;  %s509_s1 = sshll.u32 %s749_s30, 4  ;;  %s510_s1 = int_to_ptr.vmem [resolvable:$true] %s509_s1 }
  0x1e   :  { %163 = vmatpush.msra.mxu0 %v137_v1  ;;  %v292_v48 = vld [vmem:[#allocation7 + $0x38] sm:$0xff]  ;;  %v291_v51 = vld [vmem:[#allocation7 + $0x30] sm:$0xff]  ;;  %v289_v59 = vld [vmem:[#allocation7 + $0x20] sm:$0xff] }
  0x1f   :  { %311 = vmatpush.msra.mxu1 %v292_v48  ;;  %v288_v60 = vld [vmem:[#allocation7 + $0x18] sm:$0xff]  ;;  %v287_v1 = vld [vmem:[#allocation7 + $0x10] sm:$0xff] }
  0x20   :  { %164 = vmatpush.msra.mxu0 %v136_v2 }
  0x21   :  { %312 = vmatpush.msra.mxu1 %v291_v51 }
  0x22   :  { %165 = vmatpush.msra.mxu0 %v135_v3 }
  0x23   :  { %524 = vmatmul.msk.f32.vlgmr.msra.gmra.mxu0 %vm143_vm0, %v133_v4  ;;  %313 = vmatpush.msra.mxu1 %v290_v56  ;;  %v286_v4 = vld [vmem:[#allocation7 + $0x8] sm:$0xff] }
  0x25   :  { %314 = vmatpush.msra.mxu1 %v289_v59 }
  0x27   :  { %315 = vmatpush.msra.mxu1 %v288_v60 }
  0x29   :  { %316 = vmatpush.msra.mxu1 %v287_v1  ;;  %v545_v1 = vld [vmem:[%s906_s4] ss:$0 sm:$0xff] }
  0x2b   :  { %525 = vmatmul.msk.f32.gmra.mxu0 %vm143_vm0, %v134_v5  ;;  %317 = vmatpush.msra.mxu1 %v286_v4  ;;  %v546_v4 = vld [vmem:[%s908_s6] ss:$0 sm:$0xff]  ;;  %vm437_vm0 = vcmask 517120  }
  0xa0   :  { %v167_v7 = vpop.f32.mrf.mxu0 }
  0xa1   :  { %v849_v8 = vadd.f32 %v544_v6, %v167_v7 }
  0xa3   :  { %v852_v9 = vmul.f32 0.70710677, %v849_v8 }
  0xa5   :  { %v177_v10 = vmul.f32 %v852_v9, %v852_v9 }
  0xa7   :  { %v178_v11 = vmin.f32 %v177_v10, 16.0 }
  0xa8   :  { %v170_v12 = vpop.f32.mrf.mxu0 }
  0xa9   :  { %v179_v13 = vmul.f32 2.1237322e-06, %v178_v11  ;;  %v190_v14 = vmul.f32 3.8918573e-05, %v178_v11  ;;  %v856_v15 = vadd.f32 %v544_v6, %v170_v12 }
  0xab   :  { %v180_v16 = vadd.f32 0.00028619796, %v179_v13  ;;  %v191_v17 = vadd.f32 0.001143296, %v190_v14  ;;  %v859_v18 = vmul.f32 0.70710677, %v856_v15 }
  0xad   :  { %v181_v19 = vmul.f32 %v180_v16, %v178_v11  ;;  %v192_v20 = vmul.f32 %v191_v17, %v178_v11  ;;  %v217_v21 = vmul.f32 %v859_v18, %v859_v18 }
  0xaf   :  { %v193_v22 = vadd.f32 0.014752088, %v192_v20  ;;  %v182_v23 = vadd.f32 0.0036580483, %v181_v19  ;;  %v863_v24 = vmin.f32 %v217_v21, 16.0  ;;  %v330_v19 = vld [vmem:[#allocation8 + $0x38] sm:$0xff] }
  0xb0   :  { %v329_v20 = vld [vmem:[#allocation8 + $0x30] sm:$0xff]  ;;  %346 = vmatpush.msra.mxu2 %v330_v19 }
  0xb1   :  { %v194_v25 = vmul.f32 %v193_v22, %v178_v11  ;;  %v219_v26 = vmul.f32 2.1237322e-06, %v863_v24  ;;  %v230_v27 = vmul.f32 3.8918573e-05, %v863_v24  ;;  %v183_v29 = vmul.f32 %v182_v23, %v178_v11 }
  0xb2   :  { %v747_v23 = vmov 8.0   ;;  %347 = vmatpush.msra.mxu2 %v329_v20  ;;  %v407_v20 = vld [vmem:[#allocation10 + $0x28] sm:$0xff] }
  0xb3   :  { %v195_v28 = vadd.f32 0.112945676, %v194_v25  ;;  %v220_v30 = vadd.f32 0.00028619796, %v219_v26  ;;  %v231_v31 = vadd.f32 0.001143296, %v230_v27 }
  0xb4   :  { %v184_v36 = vadd.f32 0.05243302, %v183_v29  ;;  %v328_v27 = vld [vmem:[#allocation8 + $0x28] sm:$0xff] }
  0xb5   :  { %v196_v32 = vmul.f32 %v195_v28, %v178_v11  ;;  %v221_v33 = vmul.f32 %v220_v30, %v863_v24  ;;  %v232_v34 = vmul.f32 %v231_v31, %v863_v24  ;;  %v173_v28 = vmul.f32 0.5, %v849_v8  ;;  %v327_v30 = vld [vmem:[#allocation8 + $0x20] sm:$0xff]  ;;  %348 = vmatpush.msra.mxu2 %v328_v27 }
  0xb6   :  { %v185_v42 = vmul.f32 %v184_v36, %v178_v11 }
  0xb7   :  { %v197_v35 = vadd.f32 0.4994258, %v196_v32  ;;  %v233_v37 = vadd.f32 0.014752088, %v232_v34  ;;  %v222_v39 = vadd.f32 0.0036580483, %v221_v33  ;;  %349 = vmatpush.msra.mxu2 %v327_v30 }
  0xb8   :  { %v186_v46 = vadd.f32 0.18741608, %v185_v42  ;;  %v402_v30 = vld [vmem:[#allocation10] sm:$0xff] }
  0xb9   :  { %v198_v38 = vmul.f32 %v197_v35, %v178_v11  ;;  %v234_v40 = vmul.f32 %v233_v37, %v863_v24  ;;  %v223_v44 = vmul.f32 %v222_v39, %v863_v24  ;;  %v326_v35 = vld [vmem:[#allocation8 + $0x18] sm:$0xff] }
  0xba   :  { %v187_v53 = vmul.f32 %v186_v46, %v178_v11  ;;  %v285_v11 = vld [vmem:[#allocation7] sm:$0xff]  ;;  %350 = vmatpush.msra.mxu2 %v326_v35 }
  0xbb   :  { %v199_v41 = vadd.f32 1.0, %v198_v38  ;;  %v235_v43 = vadd.f32 0.112945676, %v234_v40  ;;  %v224_v49 = vadd.f32 0.05243302, %v223_v44  ;;  %318 = vmatpush.msra.mxu1 %v285_v11  ;;  %v325_v40 = vld [vmem:[#allocation8 + $0x10] sm:$0xff] }
  0xbc   :  { %v188_v62 = vadd.f32 1.1283791, %v187_v53  ;;  %351 = vmatpush.msra.mxu2 %v325_v40  ;;  %v174_v44 = vmul.f32 0.5, %v856_v15 }
  0xbd   :  { %549 = vrcp.f32 %v199_v41  ;;  %v236_v45 = vmul.f32 %v235_v43, %v863_v24  ;;  %v225_v57 = vmul.f32 %v224_v49, %v863_v24  ;;  %v211_v61 = vand.u32 2147483648, %v199_v41 }
  0xbe   :  { %v209_v0 = vand.u32 2147483647, %v199_v41  ;;  %vm205_vm2 = vweird.f32 %v199_v41  ;;  %v189_v7 = vmul.f32 %v188_v62, %v852_v9 }
  0xbf   :  { %v237_v47 = vadd.f32 0.4994258, %v236_v45  ;;  %v226_v2 = vadd.f32 0.18741608, %v225_v57  ;;  %v212_v5 = vor.u32 1.1754944e-38, %v211_v61 }
  0xc0   :  { %vm210_vm4 = vcmp.eq.f32.partialorder %v209_v0, 8.507059e+37  ;;  %v323_v0 = vld [vmem:[#allocation8] sm:$0xff] }
  0xc1   :  { %v238_v50 = vmul.f32 %v237_v47, %v863_v24  ;;  %v227_v13 = vmul.f32 %v226_v2, %v863_v24 }
  0xc3   :  { %v550_v52 = vpop.eup %549  ;;  %v239_v55 = vadd.f32 1.0, %v238_v50  ;;  %v228_v25 = vadd.f32 1.1283791, %v227_v13 }
  0xc4   :  { %v201_v54 = vmul.f32 %v550_v52, %v199_v41  ;;  %vm206_vm1 = vweird.f32 %v550_v52 }
  0xc5   :  { %551 = vrcp.f32 %v239_v55  ;;  %vm207_vm3 = vmor %vm205_vm2, %vm206_vm1  ;;  %v251_v22 = vand.u32 2147483648, %v239_v55  ;;  %v249_v26 = vand.u32 2147483647, %v239_v55  ;;  %vm245_vm7 = vweird.f32 %v239_v55 }
  0xc6   :  { %v202_v58 = vsub.f32 1.0, %v201_v54  ;;  %553 = vrcp.f32 %v747_v23  ;;  %v229_v33 = vmul.f32 %v228_v25, %v859_v18  ;;  %v406_v23 = vld [vmem:[#allocation10 + $0x20] sm:$0xff]  ;;  %v405_v25 = vld [vmem:[#allocation10 + $0x18] sm:$0xff] }
  0xc7   :  { %v252_v32 = vor.u32 1.1754944e-38, %v251_v22  ;;  %vm250_vm9 = vcmp.eq.f32.partialorder %v249_v26, 8.507059e+37  ;;  %v404_v26 = vld [vmem:[#allocation10 + $0x10] sm:$0xff] }
  0xc8   :  { %v203_v63 = vmul.f32 %v550_v52, %v202_v58 }
  0xca   :  { %v204_v3 = vadd.f32 %v550_v52, %v203_v63  ;;  %v324_v63 = vld [vmem:[#allocation8 + $0x8] sm:$0xff] }
  0xcb   :  { %v552_v6 = vpop.eup %551  ;;  %352 = vmatpush.msra.mxu2 %v324_v63 }
  0xcc   :  { %v208_v10 = vsel %vm207_vm3, %v550_v52, %v204_v3  ;;  %v241_v14 = vmul.f32 %v552_v6, %v239_v55  ;;  %vm246_vm5 = vweird.f32 %v552_v6  ;;  %v554_v36 = vpop.eup %553 }
  0xcd   :  { %v213_v12 = vsel %vm210_vm4, %v212_v5, %v208_v10  ;;  %vm247_vm8 = vmor %vm245_vm7, %vm246_vm5  ;;  %v277_v43 = vmul.f32 8.0, %v554_v36  ;;  %vm281_vm10 = vweird.f32 %v554_v36  ;;  %353 = vmatpush.msra.mxu2 %v323_v0 }
  0xce   :  { %v214_v16 = vmul.f32 %v213_v12, %v189_v7  ;;  %v242_v17 = vsub.f32 1.0, %v241_v14  ;;  %v409_v12 = vld [vmem:[#allocation10 + $0x38] sm:$0xff] }
  0xcf   :  { %v278_v47 = vsub.f32 1.0, %v277_v43  ;;  %425 = vmatpush.msra.mxu3 %v409_v12  ;;  %v475_v12 = vld [vmem:[#allocation11 + $0x18] sm:$0xff] }
  0xd0   :  { %v526_v21 = vclamps-f32 %v214_v16, 1.0  ;;  %v243_v9 = vmul.f32 %v552_v6, %v242_v17  ;;  %v408_v16 = vld [vmem:[#allocation10 + $0x30] sm:$0xff] }
  0xd1   :  { %v279_v51 = vmul.f32 %v554_v36, %v278_v47  ;;  %426 = vmatpush.msra.mxu3 %v408_v16  ;;  %v472_v16 = vld [vmem:[#allocation11] sm:$0xff] }
  0xd2   :  { %v257_v24 = vadd.f32 1.0, %v526_v21  ;;  %v244_v29 = vadd.f32 %v552_v6, %v243_v9 }
  0xd3   :  { %v280_v55 = vadd.f32 %v554_v36, %v279_v51  ;;  %427 = vmatpush.msra.mxu3 %v407_v20 }
  0xd4   :  { %v259_v31 = vmul.f32 %v257_v24, %v173_v28  ;;  %v248_v34 = vsel %vm247_vm8, %v552_v6, %v244_v29  ;;  %v403_v24 = vld [vmem:[#allocation10 + $0x8] sm:$0xff] }
  0xd5   :  { %v253_v38 = vsel %vm250_vm9, %v252_v32, %v248_v34  ;;  %v282_v59 = vsel %vm281_vm10, %v554_v36, %v280_v55  ;;  %428 = vmatpush.msra.mxu3 %v406_v23  ;;  %v547_v55 = vld [vmem:[%s910_s8] ss:$0 sm:$0xff] }
  0xd6   :  { %v262_v37 = vsel %vm261_vm6, %v259_v31, 0.0  ;;  %v254_v39 = vmul.f32 %v253_v38, %v229_v33 }
  0xd7   :  { %v263_v8 = vrot.slane %v262_v37, 4  ;;  %429 = vmatpush.msra.mxu3 %v405_v25 }
  0xd8   :  { %v527_v42 = vclamps-f32 %v254_v39, 1.0 }
  0xd9   :  { %v264_v41 = vadd.f32 %v263_v8, %v262_v37  ;;  %430 = vmatpush.msra.mxu3 %v404_v26 }
  0xda   :  { %v258_v45 = vadd.f32 1.0, %v527_v42 }
  0xdb   :  { %v265_v18 = vrot.slane %v264_v41, 2  ;;  %431 = vmatpush.msra.mxu3 %v403_v24 }
  0xdc   :  { %v260_v46 = vmul.f32 %v258_v45, %v174_v44 }
  0xdd   :  { %v266_v49 = vadd.f32 %v265_v18, %v264_v41  ;;  %432 = vmatpush.msra.mxu3 %v402_v30 }
  0xde   :  { %v269_v48 = vsel %vm261_vm6, %v260_v46, 0.0 }
  0xdf   :  { %v270_v50 = vrot.slane %v269_v48, 4  ;;  %v267_v54 = vrot.slane %v266_v49, 1 }
  0xe1   :  { %v271_v52 = vadd.f32 %v270_v50, %v269_v48  ;;  %v268_v57 = vadd.f32 %v267_v54, %v266_v49 }
  0xe3   :  { %v272_v53 = vrot.slane %v271_v52, 2  ;;  %v283_v15 = vmul.f32 %v282_v59, %v268_v57 }
  0xe5   :  { %v273_v56 = vadd.f32 %v272_v53, %v271_v52 }
  0xe7   :  { %v274_v58 = vrot.slane %v273_v56, 1 }
  0xe9   :  { %v275_v60 = vadd.f32 %v274_v58, %v273_v56 }
  0xeb   :  { %v284_v61 = vmul.f32 %v282_v59, %v275_v60  ;;  %v748_v59 = vmov 64.0  }
  0xed   :  { %v300_v62 = vsel %vm299_vm11, %v284_v61, %v283_v15 }
  0xee   :  { %528 = vmatmul.msk.f32.vlgmr.msra.gmra.mxu1 %vm261_vm6, %v300_v62 }
 0x16b   :  { %v320_v2 = vpop.f32.mrf.mxu1 }
 0x16c   :  { %v321_v3 = vadd.f32 %v545_v1, %v320_v2 }
 0x16e   :  { %529 = vmatmul.msk.f32.vlgmr.msra.gmra.mxu2 %vm261_vm6, %v321_v3 }
 0x1f1   :  { %v355_v5 = vpop.f32.mrf.mxu2 }
 0x1f2   :  { %v356_v6 = vadd.f32 %v546_v4, %v355_v5 }
 0x1f4   :  { %v359_v7 = vmul.f32 0.70710677, %v356_v6  ;;  %v358_v52 = vmul.f32 0.5, %v356_v6  ;;  %v479_v6 = vld [vmem:[#allocation11 + $0x38] sm:$0xff] }
 0x1f5   :  { %491 = vmatpush.msrb.mxu0 %v479_v6 }
 0x1f6   :  { %v360_v10 = vmul.f32 %v359_v7, %v359_v7 }
 0x1f8   :  { %v361_v11 = vmin.f32 %v360_v10, 16.0  ;;  %v477_v10 = vld [vmem:[#allocation11 + $0x28] sm:$0xff] }
 0x1fa   :  { %v362_v13 = vmul.f32 2.1237322e-06, %v361_v11  ;;  %v373_v14 = vmul.f32 3.8918573e-05, %v361_v11 }
 0x1fc   :  { %v363_v17 = vadd.f32 0.00028619796, %v362_v13  ;;  %v374_v19 = vadd.f32 0.001143296, %v373_v14  ;;  %v474_v13 = vld [vmem:[#allocation11 + $0x10] sm:$0xff]  ;;  %v473_v14 = vld [vmem:[#allocation11 + $0x8] sm:$0xff] }
 0x1fe   :  { %v364_v21 = vmul.f32 %v363_v17, %v361_v11  ;;  %v375_v22 = vmul.f32 %v374_v19, %v361_v11 }
 0x200   :  { %v376_v9 = vadd.f32 0.014752088, %v375_v22  ;;  %v365_v27 = vadd.f32 0.0036580483, %v364_v21 }
 0x202   :  { %v377_v28 = vmul.f32 %v376_v9, %v361_v11  ;;  %v366_v31 = vmul.f32 %v365_v27, %v361_v11  ;;  %v548_v27 = vld [vmem:[%s911_s9] ss:$0 sm:$0xff] }
 0x204   :  { %v378_v29 = vadd.f32 0.112945676, %v377_v28  ;;  %v367_v34 = vadd.f32 0.05243302, %v366_v31 }
 0x206   :  { %v379_v32 = vmul.f32 %v378_v29, %v361_v11  ;;  %v368_v37 = vmul.f32 %v367_v34, %v361_v11 }
 0x208   :  { %v380_v33 = vadd.f32 0.4994258, %v379_v32  ;;  %v369_v38 = vadd.f32 0.18741608, %v368_v37 }
 0x20a   :  { %v381_v35 = vmul.f32 %v380_v33, %v361_v11  ;;  %v370_v39 = vmul.f32 %v369_v38, %v361_v11  ;;  %v476_v11 = vld [vmem:[#allocation11 + $0x20] sm:$0xff] }
 0x20c   :  { %v382_v36 = vadd.f32 1.0, %v381_v35  ;;  %v371_v43 = vadd.f32 1.1283791, %v370_v39 }
 0x20e   :  { %555 = vrcp.f32 %v382_v36  ;;  %v394_v42 = vand.u32 2147483648, %v382_v36  ;;  %v392_v45 = vand.u32 2147483647, %v382_v36  ;;  %vm388_vm13 = vweird.f32 %v382_v36 }
 0x20f   :  { %v372_v47 = vmul.f32 %v371_v43, %v359_v7  ;;  %557 = vrcp.f32 %v748_v59  ;;  %v478_v7 = vld [vmem:[#allocation11 + $0x30] sm:$0xff] }
 0x210   :  { %v395_v46 = vor.u32 1.1754944e-38, %v394_v42  ;;  %vm393_vm15 = vcmp.eq.f32.partialorder %v392_v45, 8.507059e+37  ;;  %492 = vmatpush.msrb.mxu0 %v478_v7 }
 0x212   :  { %493 = vmatpush.msrb.mxu0 %v477_v10 }
 0x214   :  { %v556_v8 = vpop.eup %555  ;;  %494 = vmatpush.msrb.mxu0 %v476_v11 }
 0x215   :  { %v384_v40 = vmul.f32 %v556_v8, %v382_v36  ;;  %vm389_vm12 = vweird.f32 %v556_v8  ;;  %v558_v60 = vpop.eup %557 }
 0x216   :  { %vm390_vm14 = vmor %vm388_vm13, %vm389_vm12  ;;  %v442_v15 = vmul.f32 64.0, %v558_v60  ;;  %vm446_vm1 = vweird.f32 %v558_v60  ;;  %495 = vmatpush.msrb.mxu0 %v475_v12 }
 0x217   :  { %v385_v41 = vsub.f32 1.0, %v384_v40 }
 0x218   :  { %v443_v61 = vsub.f32 1.0, %v442_v15  ;;  %496 = vmatpush.msrb.mxu0 %v474_v13 }
 0x219   :  { %v386_v44 = vmul.f32 %v556_v8, %v385_v41 }
 0x21a   :  { %v444_v62 = vmul.f32 %v558_v60, %v443_v61  ;;  %497 = vmatpush.msrb.mxu0 %v473_v14 }
 0x21b   :  { %v387_v18 = vadd.f32 %v556_v8, %v386_v44 }
 0x21c   :  { %v445_v63 = vadd.f32 %v558_v60, %v444_v62  ;;  %498 = vmatpush.msrb.mxu0 %v472_v16 }
 0x21d   :  { %v391_v48 = vsel %vm390_vm14, %v556_v8, %v387_v18 }
 0x21e   :  { %v396_v49 = vsel %vm393_vm15, %v395_v46, %v391_v48  ;;  %v447_v0 = vsel %vm446_vm1, %v558_v60, %v445_v63 }
 0x21f   :  { %v397_v50 = vmul.f32 %v396_v49, %v372_v47 }
 0x221   :  { %v530_v51 = vclamps-f32 %v397_v50, 1.0 }
 0x223   :  { %v400_v53 = vadd.f32 1.0, %v530_v51 }
 0x225   :  { %v401_v54 = vmul.f32 %v400_v53, %v358_v52 }
 0x227   :  { %531 = vmatmul.msk.f32.vlgmr.msra.gmra.mxu3 %vm261_vm6, %v401_v54 }
 0x2aa   :  { %v434_v56 = vpop.f32.mrf.mxu3 }
 0x2ab   :  { %v435_v57 = vadd.f32 %v547_v55, %v434_v56 }
 0x2ad   :  { %v438_v58 = vsel %vm437_vm0, %v435_v57, 0.0 }
 0x2ae   :  { %439 = vadd.xlane.f32.xlu0 %v438_v58 }
 0x321   :  { %v440_v1 = vpop.xlane.xlu0 %439 }
 0x322   :  { %v448_v2 = vmul.f32 %v447_v0, %v440_v1 }
 0x324   :  { %v449_v3 = vsub.f32 %v435_v57, %v448_v2 }
 0x326   :  { %v450_v4 = vmul.f32 %v449_v3, %v449_v3 }
 0x328   :  { %v451_v5 = vsel %vm437_vm0, %v450_v4, 0.0 }
 0x329   :  { %452 = vadd.xlane.f32.xlu0 %v451_v5 }
 0x39c   :  { %v453_v17 = vpop.xlane.xlu0 %452 }
 0x39d   :  { %v454_v19 = vmul.f32 %v453_v17, %v447_v0 }
 0x39f   :  { %v455_v20 = vadd.f32 1e-05, %v454_v19 }
 0x3a1   :  { %559 = vrsqrt.f32 %v455_v20  ;;  %vm462_vm3 = vweird.f32 %v455_v20 }
 0x3a7   :  { %v560_v21 = vpop.eup %559 }
 0x3a8   :  { %v457_v22 = vmul.f32 %v560_v21, %v455_v20  ;;  %vm463_vm2 = vweird.f32 %v560_v21 }
 0x3a9   :  { %vm464_vm4 = vmor %vm462_vm3, %vm463_vm2 }
 0x3aa   :  { %v458_v23 = vmul.f32 %v560_v21, %v457_v22 }
 0x3ac   :  { %v459_v25 = vmul.f32 0.5, %v458_v23 }
 0x3ae   :  { %v460_v9 = vsub.f32 1.5, %v459_v25 }
 0x3b0   :  { %v461_v26 = vmul.f32 %v560_v21, %v460_v9 }
 0x3b2   :  { %v465_v28 = vsel %vm464_vm4, %v560_v21, %v461_v26 }
 0x3b3   :  { %v466_v24 = vmul.f32 %v465_v28, %v449_v3 }
 0x3b5   :  { %v471_v29 = vmul.f32 %v548_v27, %v466_v24 }
 0x3b7   :  { %532 = vmatmul.msk.f32.vlgmr.msrb.gmra.mxu0 %vm261_vm6, %v471_v29 }
 0x434   :  { %v500_v30 = vpop.f32.mrf.mxu0 }
 0x435   :  { %503 = vst [vmem:[#allocation13] sm:$0x3] %v500_v30 }
 0x436   :  { %514 = dma.vmem_to_hbm [thread:$0]  %s510_s1, 32, %s512_s13, [#allocation4]  }
 0x437   :  { %737 = dma.done.wait [#allocation4], 32  }
 0x438   :  { %738 = vsyncadd [#allocation4], 4294967264 }
 0x439   :  { %519 = vsyncpa [#allocation3], 1 }
 0x43a   :  { %520 = vsyncpa [#allocation6], 1 }
 0x43b   :  { %521 = vsyncpa [#allocation9], 1 }
 0x43c   :  { %522 = vsyncpa [#allocation12], 1 }
 0x43d   :  { %523 = vsyncpa [#allocation4], 1 }

</bundles_post_ra>
